<compile_context>
chip_gen: v7x
topology: tpu7x:2x2x1
jax: 0.10.0
libtpu: 0.0.40
codegen_flags: <defaults>
</compile_context>

<pallas_src>
import functools

import jax
import jax.numpy as jnp
from jax.experimental import pallas as pl
from jax.experimental.pallas import tpu as pltpu

# Small version shim (newer jax: CompilerParams; older: TPUCompilerParams).
_CompilerParams = getattr(pltpu, "CompilerParams", None) or getattr(
    pltpu, "TPUCompilerParams")


def _round_up(x, m):
    return (x + m - 1) // m * m


def _conv_relu_kernel(x0_ref, x1_ref, w_ref, b_ref, out_ref, xwin_ref, *, tm, wp):
    # x0_ref, x1_ref: (TM, Cin) bf16 -- flat padded-input rows [i*TM,(i+1)*TM)
    #                 and [(i+1)*TM,(i+2)*TM)   (overlap window for the taps).
    # w_ref:          (9, Cin, TN) bf16 -- per-tap weights (resident, tiny).
    # b_ref:          (1, TN) f32 bias.
    # out_ref:        (TM, TN) f32 output tile (used as the accumulator).
    # xwin_ref:       (2*TM, Cin) f32 VMEM scratch (contiguous row window).
    xwin_ref[0:tm, :] = x0_ref[...].astype(jnp.float32)
    xwin_ref[tm:2 * tm, :] = x1_ref[...].astype(jnp.float32)

    out_ref[...] = jnp.zeros_like(out_ref)
    for kh in range(3):
        for kw in range(3):
            d = kh * wp + kw                                  # static offset
            xs = xwin_ref[d:d + tm, :].astype(jnp.bfloat16)   # (TM, Cin)
            out_ref[...] += jnp.dot(xs, w_ref[kh * 3 + kw],
                                    preferred_element_type=jnp.float32)
    # Bias + ReLU epilogue, once per tile, in f32.
    out_ref[...] = jnp.maximum(out_ref[...] + b_ref[...], 0.0)


def conv_relu(x_nchw, weight, bias, *, tm=512, tn=128):
    """3x3 / stride 1 / pad 1 conv + ReLU.

    x_nchw: (N, Cin, H, W) f32; weight: (Cout, Cin, 3, 3); bias: (Cout,).
    Returns (N, Cout, H, W) f32.
    """
    N, Cin, H, W = x_nchw.shape
    Cout = weight.shape[0]
    Hp, Wp = H + 2, W + 2

    # TM must cover the largest tap offset (2*Wp + 2) and stay sublane-aligned.
    tm = _round_up(max(tm, 2 * Wp + 2), 8)
    cout_p = _round_up(Cout, tn)

    m = N * Hp * Wp                      # rows of the padded-grid output
    g_m = pl.cdiv(m, tm)
    g_n = cout_p // tn
    m_pad = (g_m + 1) * tm               # +1 block so the shifted view is in-bounds

    # ---- glue: NCHW -> padded NHWC -> flat (pixel-row, Cin) bf16 -------------
    x_nhwc = jnp.transpose(x_nchw, (0, 2, 3, 1))                  # (N,H,W,Cin)
    xp = jnp.pad(x_nhwc, ((0, 0), (1, 1), (1, 1), (0, 0)))        # (N,Hp,Wp,Cin)
    xf = xp.reshape(N * Hp * Wp, Cin)
    xf = jnp.pad(xf, ((0, m_pad - m), (0, 0))).astype(jnp.bfloat16)

    # weight (Cout,Cin,3,3) -> (9, Cin, Cout_p) bf16; bias -> (1, Cout_p) f32.
    w9 = jnp.transpose(weight, (2, 3, 1, 0)).reshape(9, Cin, Cout)
    w9 = jnp.pad(w9, ((0, 0), (0, 0), (0, cout_p - Cout))).astype(jnp.bfloat16)
    b2 = jnp.pad(bias, (0, cout_p - Cout)).reshape(1, cout_p).astype(jnp.float32)

    kernel = functools.partial(_conv_relu_kernel, tm=tm, wp=Wp)

    # TODO(synk): for very large Cin (>= ~512) add a K grid axis ("arbitrary")
    # with a pl.when-initialized accumulator instead of the single 9-tap loop.
    out_flat = pl.pallas_call(
        kernel,
        out_shape=jax.ShapeDtypeStruct((g_m * tm, cout_p), jnp.float32),
        grid=(g_m, g_n),
        in_specs=[
            pl.BlockSpec((tm, Cin), lambda i, j: (i, 0)),          # rows i
            pl.BlockSpec((tm, Cin), lambda i, j: (i + 1, 0)),      # rows i+1
            pl.BlockSpec((9, Cin, tn), lambda i, j: (0, 0, j)),    # weights
            pl.BlockSpec((1, tn), lambda i, j: (0, j)),            # bias
        ],
        out_specs=pl.BlockSpec((tm, tn), lambda i, j: (i, j)),
        scratch_shapes=[pltpu.VMEM((2 * tm, Cin), jnp.float32)],
        compiler_params=_CompilerParams(
            dimension_semantics=("parallel", "parallel"),
            vmem_limit_bytes=32 * 1024 * 1024),
    )(xf, xf, w9, b2)

    # ---- glue: padded-grid rows -> NCHW --------------------------------------
    # (Callers that can stay NHWC should skip the final transpose.)
    out = out_flat[:m, :Cout].reshape(N, Hp, Wp, Cout)[:, :H, :W, :]
    return jnp.transpose(out, (0, 3, 1, 2))                       # (N,Cout,H,W)


def _reference_conv_relu(x, weight, bias):
    """Pure-JAX reference (matches torch.nn.Conv2d(in,out,3,1,1) + ReLU)."""
    out = jax.lax.conv_general_dilated(
        x, weight, window_strides=(1, 1), padding=((1, 1), (1, 1)),
        dimension_numbers=("NCHW", "OIHW", "NCHW"))
    out = out + bias.reshape(1, -1, 1, 1)
    return jnp.maximum(out, 0.0)


if __name__ == "__main__":
    key = jax.random.PRNGKey(0)
    k_x, k_w, k_b = jax.random.split(key, 3)

    N, Cin, Cout, H, W = 2, 4, 8, 16, 16
    x = jax.random.normal(k_x, (N, Cin, H, W), dtype=jnp.float32)

    # Deterministic "PyTorch-like" init (uniform in +/- 1/sqrt(fan_in)).
    fan_in = Cin * 3 * 3
    bound = 1.0 / (fan_in ** 0.5)
    weight = jax.random.uniform(k_w, (Cout, Cin, 3, 3), jnp.float32,
                                minval=-bound, maxval=bound)
    bias = jax.random.uniform(k_b, (Cout,), jnp.float32,
                              minval=-bound, maxval=bound)

    out = jax.jit(conv_relu)(x, weight, bias)
    out = jax.block_until_ready(out)

    ref = _reference_conv_relu(x, weight, bias)
    assert out.shape == (N, Cout, H, W)
    # bf16 MXU operands (f32 accumulate) -> relaxed tolerance vs f32 reference.
    err = float(jnp.max(jnp.abs(out - ref)))
    assert jnp.allclose(out, ref, atol=2e-2, rtol=2e-2), err

    print("KERNEL_OK")
</pallas_src>

<mosaic_0001>
module attributes {stable_mosaic.version = 11 : i64} {
  func.func @_conv_relu_kernel(%arg0: i32, %arg1: i32, %arg2: memref<512x4xbf16, #tpu.memory_space<vmem>>, %arg3: memref<512x4xbf16, #tpu.memory_space<vmem>>, %arg4: memref<9x4x128xbf16, #tpu.memory_space<vmem>>, %arg5: memref<1x128xf32, #tpu.memory_space<vmem>>, %arg6: memref<512x128xf32, #tpu.memory_space<vmem>>, %arg7: memref<1024x4xf32, #tpu.memory_space<vmem>>) attributes {dimension_semantics = [#tpu.dimension_semantics<parallel>, #tpu.dimension_semantics<parallel>], iteration_bounds = array<i64: 2, 1>, scalar_prefetch = 0 : i64, scratch_operands = 1 : i64, tpu.core_type = #tpu.core_type<tc>, window_params = [{transform_indices = @transform_0, window_bounds = array<i64: 512, 4>}, {transform_indices = @transform_1, window_bounds = array<i64: 512, 4>}, {transform_indices = @transform_2, window_bounds = array<i64: 9, 4, 128>}, {transform_indices = @transform_3, window_bounds = array<i64: 1, 128>}, {transform_indices = @transform_4, window_bounds = array<i64: 512, 128>}]} {
    %c0 = arith.constant 0 : index
    %c0_0 = arith.constant 0 : index
    %0 = vector.load %arg2[%c0, %c0_0] : memref<512x4xbf16, #tpu.memory_space<vmem>>, vector<512x4xbf16>
    %1 = arith.extf %0 : vector<512x4xbf16> to vector<512x4xf32>
    %c0_1 = arith.constant 0 : index
    %c0_2 = arith.constant 0 : index
    %2 = vector.load %arg7[%c0_1, %c0_2] : memref<1024x4xf32, #tpu.memory_space<vmem>>, vector<512x4xf32>
    tpu.vector_store %arg7[%c0_1, %c0_2], %1 {strides = array<i32>} : memref<1024x4xf32, #tpu.memory_space<vmem>>, vector<512x4xf32>,
    %c0_3 = arith.constant 0 : index
    %c0_4 = arith.constant 0 : index
    %3 = vector.load %arg3[%c0_3, %c0_4] : memref<512x4xbf16, #tpu.memory_space<vmem>>, vector<512x4xbf16>
    %4 = arith.extf %3 : vector<512x4xbf16> to vector<512x4xf32>
    %c512 = arith.constant 512 : index
    %c0_5 = arith.constant 0 : index
    %5 = vector.load %arg7[%c512, %c0_5] : memref<1024x4xf32, #tpu.memory_space<vmem>>, vector<512x4xf32>
    tpu.vector_store %arg7[%c512, %c0_5], %4 {strides = array<i32>} : memref<1024x4xf32, #tpu.memory_space<vmem>>, vector<512x4xf32>,
    %cst = arith.constant 0.000000e+00 : f32
    %6 = vector.broadcast %cst : f32 to vector<512x128xf32>
    %c0_6 = arith.constant 0 : index
    %c0_7 = arith.constant 0 : index
    %7 = vector.load %arg6[%c0_6, %c0_7] : memref<512x128xf32, #tpu.memory_space<vmem>>, vector<512x128xf32>
    tpu.vector_store %arg6[%c0_6, %c0_7], %6 {strides = array<i32>} : memref<512x128xf32, #tpu.memory_space<vmem>>, vector<512x128xf32>,
    %c0_8 = arith.constant 0 : index
    %c0_9 = arith.constant 0 : index
    %8 = vector.load %arg7[%c0_8, %c0_9] : memref<1024x4xf32, #tpu.memory_space<vmem>>, vector<512x4xf32>
    %9 = arith.truncf %8 : vector<512x4xf32> to vector<512x4xbf16>
    %c0_10 = arith.constant 0 : index
    %c0_11 = arith.constant 0 : index
    %10 = vector.load %arg6[%c0_10, %c0_11] : memref<512x128xf32, #tpu.memory_space<vmem>>, vector<512x128xf32>
    %c0_12 = arith.constant 0 : index
    %c0_13 = arith.constant 0 : index
    %c0_14 = arith.constant 0 : index
    %11 = vector.load %arg4[%c0_12, %c0_13, %c0_14] : memref<9x4x128xbf16, #tpu.memory_space<vmem>>, vector<1x4x128xbf16>
    %12 = vector.shape_cast %11 : vector<1x4x128xbf16> to vector<4x128xbf16>
    %cst_15 = arith.constant dense<0.000000e+00> : vector<512x128xf32>
    %13 = tpu.matmul %9, %12, %cst_15 {dimension_numbers = #tpu.dot_dimension_numbers<[1], [0], [0], [1], [0, 0, 1, 1], [], []>} : vector<512x4xbf16>, vector<4x128xbf16>, vector<512x128xf32> -> vector<512x128xf32>
    %14 = arith.addf %10, %13 : vector<512x128xf32>
    %c0_16 = arith.constant 0 : index
    %c0_17 = arith.constant 0 : index
    %15 = vector.load %arg6[%c0_16, %c0_17] : memref<512x128xf32, #tpu.memory_space<vmem>>, vector<512x128xf32>
    tpu.vector_store %arg6[%c0_16, %c0_17], %14 {strides = array<i32>} : memref<512x128xf32, #tpu.memory_space<vmem>>, vector<512x128xf32>,
    %c1 = arith.constant 1 : index
    %c0_18 = arith.constant 0 : index
    %16 = vector.load %arg7[%c1, %c0_18] : memref<1024x4xf32, #tpu.memory_space<vmem>>, vector<512x4xf32>
    %17 = arith.truncf %16 : vector<512x4xf32> to vector<512x4xbf16>
    %c0_19 = arith.constant 0 : index
    %c0_20 = arith.constant 0 : index
    %18 = vector.load %arg6[%c0_19, %c0_20] : memref<512x128xf32, #tpu.memory_space<vmem>>, vector<512x128xf32>
    %c1_21 = arith.constant 1 : index
    %c0_22 = arith.constant 0 : index
    %c0_23 = arith.constant 0 : index
    %19 = vector.load %arg4[%c1_21, %c0_22, %c0_23] : memref<9x4x128xbf16, #tpu.memory_space<vmem>>, vector<1x4x128xbf16>
    %20 = vector.shape_cast %19 : vector<1x4x128xbf16> to vector<4x128xbf16>
    %cst_24 = arith.constant dense<0.000000e+00> : vector<512x128xf32>
    %21 = tpu.matmul %17, %20, %cst_24 {dimension_numbers = #tpu.dot_dimension_numbers<[1], [0], [0], [1], [0, 0, 1, 1], [], []>} : vector<512x4xbf16>, vector<4x128xbf16>, vector<512x128xf32> -> vector<512x128xf32>
    %22 = arith.addf %18, %21 : vector<512x128xf32>
    %c0_25 = arith.constant 0 : index
    %c0_26 = arith.constant 0 : index
    %23 = vector.load %arg6[%c0_25, %c0_26] : memref<512x128xf32, #tpu.memory_space<vmem>>, vector<512x128xf32>
    tpu.vector_store %arg6[%c0_25, %c0_26], %22 {strides = array<i32>} : memref<512x128xf32, #tpu.memory_space<vmem>>, vector<512x128xf32>,
    %c2 = arith.constant 2 : index
    %c0_27 = arith.constant 0 : index
    %24 = vector.load %arg7[%c2, %c0_27] : memref<1024x4xf32, #tpu.memory_space<vmem>>, vector<512x4xf32>
    %25 = arith.truncf %24 : vector<512x4xf32> to vector<512x4xbf16>
    %c0_28 = arith.constant 0 : index
    %c0_29 = arith.constant 0 : index
    %26 = vector.load %arg6[%c0_28, %c0_29] : memref<512x128xf32, #tpu.memory_space<vmem>>, vector<512x128xf32>
    %c2_30 = arith.constant 2 : index
    %c0_31 = arith.constant 0 : index
    %c0_32 = arith.constant 0 : index
    %27 = vector.load %arg4[%c2_30, %c0_31, %c0_32] : memref<9x4x128xbf16, #tpu.memory_space<vmem>>, vector<1x4x128xbf16>
    %28 = vector.shape_cast %27 : vector<1x4x128xbf16> to vector<4x128xbf16>
    %cst_33 = arith.constant dense<0.000000e+00> : vector<512x128xf32>
    %29 = tpu.matmul %25, %28, %cst_33 {dimension_numbers = #tpu.dot_dimension_numbers<[1], [0], [0], [1], [0, 0, 1, 1], [], []>} : vector<512x4xbf16>, vector<4x128xbf16>, vector<512x128xf32> -> vector<512x128xf32>
    %30 = arith.addf %26, %29 : vector<512x128xf32>
    %c0_34 = arith.constant 0 : index
    %c0_35 = arith.constant 0 : index
    %31 = vector.load %arg6[%c0_34, %c0_35] : memref<512x128xf32, #tpu.memory_space<vmem>>, vector<512x128xf32>
    tpu.vector_store %arg6[%c0_34, %c0_35], %30 {strides = array<i32>} : memref<512x128xf32, #tpu.memory_space<vmem>>, vector<512x128xf32>,
    %c18 = arith.constant 18 : index
    %c0_36 = arith.constant 0 : index
    %32 = vector.load %arg7[%c18, %c0_36] : memref<1024x4xf32, #tpu.memory_space<vmem>>, vector<512x4xf32>
    %33 = arith.truncf %32 : vector<512x4xf32> to vector<512x4xbf16>
    %c0_37 = arith.constant 0 : index
    %c0_38 = arith.constant 0 : index
    %34 = vector.load %arg6[%c0_37, %c0_38] : memref<512x128xf32, #tpu.memory_space<vmem>>, vector<512x128xf32>
    %c3 = arith.constant 3 : index
    %c0_39 = arith.constant 0 : index
    %c0_40 = arith.constant 0 : index
    %35 = vector.load %arg4[%c3, %c0_39, %c0_40] : memref<9x4x128xbf16, #tpu.memory_space<vmem>>, vector<1x4x128xbf16>
    %36 = vector.shape_cast %35 : vector<1x4x128xbf16> to vector<4x128xbf16>
    %cst_41 = arith.constant dense<0.000000e+00> : vector<512x128xf32>
    %37 = tpu.matmul %33, %36, %cst_41 {dimension_numbers = #tpu.dot_dimension_numbers<[1], [0], [0], [1], [0, 0, 1, 1], [], []>} : vector<512x4xbf16>, vector<4x128xbf16>, vector<512x128xf32> -> vector<512x128xf32>
    %38 = arith.addf %34, %37 : vector<512x128xf32>
    %c0_42 = arith.constant 0 : index
    %c0_43 = arith.constant 0 : index
    %39 = vector.load %arg6[%c0_42, %c0_43] : memref<512x128xf32, #tpu.memory_space<vmem>>, vector<512x128xf32>
    tpu.vector_store %arg6[%c0_42, %c0_43], %38 {strides = array<i32>} : memref<512x128xf32, #tpu.memory_space<vmem>>, vector<512x128xf32>,
    %c19 = arith.constant 19 : index
    %c0_44 = arith.constant 0 : index
    %40 = vector.load %arg7[%c19, %c0_44] : memref<1024x4xf32, #tpu.memory_space<vmem>>, vector<512x4xf32>
    %41 = arith.truncf %40 : vector<512x4xf32> to vector<512x4xbf16>
    %c0_45 = arith.constant 0 : index
    %c0_46 = arith.constant 0 : index
    %42 = vector.load %arg6[%c0_45, %c0_46] : memref<512x128xf32, #tpu.memory_space<vmem>>, vector<512x128xf32>
    %c4 = arith.constant 4 : index
    %c0_47 = arith.constant 0 : index
    %c0_48 = arith.constant 0 : index
    %43 = vector.load %arg4[%c4, %c0_47, %c0_48] : memref<9x4x128xbf16, #tpu.memory_space<vmem>>, vector<1x4x128xbf16>
    %44 = vector.shape_cast %43 : vector<1x4x128xbf16> to vector<4x128xbf16>
    %cst_49 = arith.constant dense<0.000000e+00> : vector<512x128xf32>
    %45 = tpu.matmul %41, %44, %cst_49 {dimension_numbers = #tpu.dot_dimension_numbers<[1], [0], [0], [1], [0, 0, 1, 1], [], []>} : vector<512x4xbf16>, vector<4x128xbf16>, vector<512x128xf32> -> vector<512x128xf32>
    %46 = arith.addf %42, %45 : vector<512x128xf32>
    %c0_50 = arith.constant 0 : index
    %c0_51 = arith.constant 0 : index
    %47 = vector.load %arg6[%c0_50, %c0_51] : memref<512x128xf32, #tpu.memory_space<vmem>>, vector<512x128xf32>
    tpu.vector_store %arg6[%c0_50, %c0_51], %46 {strides = array<i32>} : memref<512x128xf32, #tpu.memory_space<vmem>>, vector<512x128xf32>,
    %c20 = arith.constant 20 : index
    %c0_52 = arith.constant 0 : index
    %48 = vector.load %arg7[%c20, %c0_52] : memref<1024x4xf32, #tpu.memory_space<vmem>>, vector<512x4xf32>
    %49 = arith.truncf %48 : vector<512x4xf32> to vector<512x4xbf16>
    %c0_53 = arith.constant 0 : index
    %c0_54 = arith.constant 0 : index
    %50 = vector.load %arg6[%c0_53, %c0_54] : memref<512x128xf32, #tpu.memory_space<vmem>>, vector<512x128xf32>
    %c5 = arith.constant 5 : index
    %c0_55 = arith.constant 0 : index
    %c0_56 = arith.constant 0 : index
    %51 = vector.load %arg4[%c5, %c0_55, %c0_56] : memref<9x4x128xbf16, #tpu.memory_space<vmem>>, vector<1x4x128xbf16>
    %52 = vector.shape_cast %51 : vector<1x4x128xbf16> to vector<4x128xbf16>
    %cst_57 = arith.constant dense<0.000000e+00> : vector<512x128xf32>
    %53 = tpu.matmul %49, %52, %cst_57 {dimension_numbers = #tpu.dot_dimension_numbers<[1], [0], [0], [1], [0, 0, 1, 1], [], []>} : vector<512x4xbf16>, vector<4x128xbf16>, vector<512x128xf32> -> vector<512x128xf32>
    %54 = arith.addf %50, %53 : vector<512x128xf32>
    %c0_58 = arith.constant 0 : index
    %c0_59 = arith.constant 0 : index
    %55 = vector.load %arg6[%c0_58, %c0_59] : memref<512x128xf32, #tpu.memory_space<vmem>>, vector<512x128xf32>
    tpu.vector_store %arg6[%c0_58, %c0_59], %54 {strides = array<i32>} : memref<512x128xf32, #tpu.memory_space<vmem>>, vector<512x128xf32>,
    %c36 = arith.constant 36 : index
    %c0_60 = arith.constant 0 : index
    %56 = vector.load %arg7[%c36, %c0_60] : memref<1024x4xf32, #tpu.memory_space<vmem>>, vector<512x4xf32>
    %57 = arith.truncf %56 : vector<512x4xf32> to vector<512x4xbf16>
    %c0_61 = arith.constant 0 : index
    %c0_62 = arith.constant 0 : index
    %58 = vector.load %arg6[%c0_61, %c0_62] : memref<512x128xf32, #tpu.memory_space<vmem>>, vector<512x128xf32>
    %c6 = arith.constant 6 : index
    %c0_63 = arith.constant 0 : index
    %c0_64 = arith.constant 0 : index
    %59 = vector.load %arg4[%c6, %c0_63, %c0_64] : memref<9x4x128xbf16, #tpu.memory_space<vmem>>, vector<1x4x128xbf16>
    %60 = vector.shape_cast %59 : vector<1x4x128xbf16> to vector<4x128xbf16>
    %cst_65 = arith.constant dense<0.000000e+00> : vector<512x128xf32>
    %61 = tpu.matmul %57, %60, %cst_65 {dimension_numbers = #tpu.dot_dimension_numbers<[1], [0], [0], [1], [0, 0, 1, 1], [], []>} : vector<512x4xbf16>, vector<4x128xbf16>, vector<512x128xf32> -> vector<512x128xf32>
    %62 = arith.addf %58, %61 : vector<512x128xf32>
    %c0_66 = arith.constant 0 : index
    %c0_67 = arith.constant 0 : index
    %63 = vector.load %arg6[%c0_66, %c0_67] : memref<512x128xf32, #tpu.memory_space<vmem>>, vector<512x128xf32>
    tpu.vector_store %arg6[%c0_66, %c0_67], %62 {strides = array<i32>} : memref<512x128xf32, #tpu.memory_space<vmem>>, vector<512x128xf32>,
    %c37 = arith.constant 37 : index
    %c0_68 = arith.constant 0 : index
    %64 = vector.load %arg7[%c37, %c0_68] : memref<1024x4xf32, #tpu.memory_space<vmem>>, vector<512x4xf32>
    %65 = arith.truncf %64 : vector<512x4xf32> to vector<512x4xbf16>
    %c0_69 = arith.constant 0 : index
    %c0_70 = arith.constant 0 : index
    %66 = vector.load %arg6[%c0_69, %c0_70] : memref<512x128xf32, #tpu.memory_space<vmem>>, vector<512x128xf32>
    %c7 = arith.constant 7 : index
    %c0_71 = arith.constant 0 : index
    %c0_72 = arith.constant 0 : index
    %67 = vector.load %arg4[%c7, %c0_71, %c0_72] : memref<9x4x128xbf16, #tpu.memory_space<vmem>>, vector<1x4x128xbf16>
    %68 = vector.shape_cast %67 : vector<1x4x128xbf16> to vector<4x128xbf16>
    %cst_73 = arith.constant dense<0.000000e+00> : vector<512x128xf32>
    %69 = tpu.matmul %65, %68, %cst_73 {dimension_numbers = #tpu.dot_dimension_numbers<[1], [0], [0], [1], [0, 0, 1, 1], [], []>} : vector<512x4xbf16>, vector<4x128xbf16>, vector<512x128xf32> -> vector<512x128xf32>
    %70 = arith.addf %66, %69 : vector<512x128xf32>
    %c0_74 = arith.constant 0 : index
    %c0_75 = arith.constant 0 : index
    %71 = vector.load %arg6[%c0_74, %c0_75] : memref<512x128xf32, #tpu.memory_space<vmem>>, vector<512x128xf32>
    tpu.vector_store %arg6[%c0_74, %c0_75], %70 {strides = array<i32>} : memref<512x128xf32, #tpu.memory_space<vmem>>, vector<512x128xf32>,
    %c38 = arith.constant 38 : index
    %c0_76 = arith.constant 0 : index
    %72 = vector.load %arg7[%c38, %c0_76] : memref<1024x4xf32, #tpu.memory_space<vmem>>, vector<512x4xf32>
    %73 = arith.truncf %72 : vector<512x4xf32> to vector<512x4xbf16>
    %c0_77 = arith.constant 0 : index
    %c0_78 = arith.constant 0 : index
    %74 = vector.load %arg6[%c0_77, %c0_78] : memref<512x128xf32, #tpu.memory_space<vmem>>, vector<512x128xf32>
    %c8 = arith.constant 8 : index
    %c0_79 = arith.constant 0 : index
    %c0_80 = arith.constant 0 : index
    %75 = vector.load %arg4[%c8, %c0_79, %c0_80] : memref<9x4x128xbf16, #tpu.memory_space<vmem>>, vector<1x4x128xbf16>
    %76 = vector.shape_cast %75 : vector<1x4x128xbf16> to vector<4x128xbf16>
    %cst_81 = arith.constant dense<0.000000e+00> : vector<512x128xf32>
    %77 = tpu.matmul %73, %76, %cst_81 {dimension_numbers = #tpu.dot_dimension_numbers<[1], [0], [0], [1], [0, 0, 1, 1], [], []>} : vector<512x4xbf16>, vector<4x128xbf16>, vector<512x128xf32> -> vector<512x128xf32>
    %78 = arith.addf %74, %77 : vector<512x128xf32>
    %c0_82 = arith.constant 0 : index
    %c0_83 = arith.constant 0 : index
    %79 = vector.load %arg6[%c0_82, %c0_83] : memref<512x128xf32, #tpu.memory_space<vmem>>, vector<512x128xf32>
    tpu.vector_store %arg6[%c0_82, %c0_83], %78 {strides = array<i32>} : memref<512x128xf32, #tpu.memory_space<vmem>>, vector<512x128xf32>,
    %c0_84 = arith.constant 0 : index
    %c0_85 = arith.constant 0 : index
    %80 = vector.load %arg6[%c0_84, %c0_85] : memref<512x128xf32, #tpu.memory_space<vmem>>, vector<512x128xf32>
    %c0_86 = arith.constant 0 : index
    %c0_87 = arith.constant 0 : index
    %81 = vector.load %arg5[%c0_86, %c0_87] : memref<1x128xf32, #tpu.memory_space<vmem>>, vector<1x128xf32>
    %82 = vector.broadcast %81 : vector<1x128xf32> to vector<512x128xf32>
    %83 = arith.addf %80, %82 : vector<512x128xf32>
    %cst_88 = arith.constant 0.000000e+00 : f32
    %84 = vector.broadcast %cst_88 : f32 to vector<512x128xf32>
    %85 = arith.maximumf %83, %84 : vector<512x128xf32>
    %c0_89 = arith.constant 0 : index
    %c0_90 = arith.constant 0 : index
    %86 = vector.load %arg6[%c0_89, %c0_90] : memref<512x128xf32, #tpu.memory_space<vmem>>, vector<512x128xf32>
    tpu.vector_store %arg6[%c0_89, %c0_90], %85 {strides = array<i32>} : memref<512x128xf32, #tpu.memory_space<vmem>>, vector<512x128xf32>,
    return
  }
  func.func @transform_0(%arg0: i32, %arg1: i32) -> (i32, i32) {
    %c0_i32 = arith.constant 0 : i32
    %c0_i32_0 = arith.constant 0 : i32
    return %arg0, %c0_i32 : i32, i32
  }
  func.func @transform_1(%arg0: i32, %arg1: i32) -> (i32, i32) {
    %c1_i32 = arith.constant 1 : i32
    %0 = arith.addi %arg0, %c1_i32 : i32
    %c0_i32 = arith.constant 0 : i32
    %c0_i32_0 = arith.constant 0 : i32
    return %0, %c0_i32 : i32, i32
  }
  func.func @transform_2(%arg0: i32, %arg1: i32) -> (i32, i32, i32) {
    %c0_i32 = arith.constant 0 : i32
    %c0_i32_0 = arith.constant 0 : i32
    %c0_i32_1 = arith.constant 0 : i32
    return %c0_i32, %c0_i32_0, %arg1 : i32, i32, i32
  }
  func.func @transform_3(%arg0: i32, %arg1: i32) -> (i32, i32) {
    %c0_i32 = arith.constant 0 : i32
    %c0_i32_0 = arith.constant 0 : i32
    return %c0_i32, %arg1 : i32, i32
  }
  func.func @transform_4(%arg0: i32, %arg1: i32) -> (i32, i32) {
    %c0_i32 = arith.constant 0 : i32
    return %arg0, %arg1 : i32, i32
  }
}

</mosaic_0001>

<bundles_post_ra>
// kernel: conv_relu.1
= control target key start
LH: loop header
LB: loop body
LE: loop exit
PB: predicated region body
PF: predicated region fallthrough
CT: control target
= control target key end

     0   :  { %s9652_s15 = smov 0   ;;  %s9654_s16 = smov 0   ;;  %s10660_s0 = inlined_call_operand.vmem [shape: bf16[1536,4], index: 0, kind: input, shape index: {}, may-alias: {0,1}]   ;;  %s10661_s1 = inlined_call_operand.vmem [shape: bf16[1536,4], index: 1, kind: input, shape index: {}, may-alias: {0,1}]   ;;  %s10662_s2 = inlined_call_operand.vmem [shape: bf16[9,4,128], index: 2, kind: input, shape index: {}]   ;;  %s10663_s3 = inlined_call_operand.vmem [shape: f32[1,128], index: 3, kind: input, shape index: {}]   ;;  %s10664_s4 = inlined_call_operand.vmem [shape: f32[1024,128], index: 4, kind: output, shape index: {}]  }
   0x1   :  { %s9656_s17 = smov 0  }
   0x2 LB: > { %s26_s18 = sadd.s32 1, %s9621_s16  ;;  %p7216_p0 = scmp.ge.s32.totalorder %s9625_s17, 1  ;;  %s9625_s17 = sphi %s9656_s17, %s14_s17   ;;  %s9621_s16 = sphi %s9654_s16, %s10666_s16   ;;  %s9617_s15 = sphi %s9652_s15, %s10665_s15  }
   0x3   : > { %p28_p1 = scmp.ge.s32.totalorder %s26_s18, 2  ;;  %p209_p2 = scmp.lt.s32.totalorder %s9625_s17, 3 }
   0x5   : > { %s10668_s18 = smov (%p28_p1, %s26_s18), 0  ;;  %p210_p3 = pnand %p7216_p0, %p209_p2 }
   0x6   : > { %v891_v0 = vld [vmem:[%s10662_s2] sm:$0x3] (!%p210_p3)  ;;  %vm988_vm0 = vcmask (!%p210_p3), 1041408   ;;  %v7354_v1 = vld [vmem:[%s10662_s2 + $0x8] sm:$0x3] (!%p210_p3)  ;;  %s9676_s23 = sshll.u32 (!%p210_p3), %s9617_s15, 6 }
   0x7   : > { %213 = sbr.rel (%p210_p3) target bundleno = 827 (0x33b), region = 36  ;;  %9567 = vmatprep.subr.msk.bf16.mxu1 (!%p210_p3), %vm988_vm0, %v891_v0  ;;  %v990_v2 = vsel (!%p210_p3), %vm988_vm0, %v891_v0, 0  ;;  %9571 = vmatprep.subr.msk.bf16.mxu0 (!%p210_p3), %vm988_vm0, %v7354_v1  ;;  %v9682_v3 = vsel (!%p210_p3), %vm988_vm0, %v7354_v1, 0  ;;  %p252_p4 = scmp.lt.s32.totalorder (!%p210_p3), %s9676_s23, 191  ;;  %v7255_v4 = vld [vmem:[%s10662_s2 + $0x2] sm:$0x3] (!%p210_p3) }
   0x8   : > { %8140 = vmatpush3.bf16.msra.mxu1 (!%p210_p3), %v990_v2  ;;  %8404 = vmatpush3.bf16.msra.mxu0 (!%p210_p3), %v9682_v3  ;;  %v7387_v5 = vld [vmem:[%s10662_s2 + $0xa] sm:$0x3] (!%p210_p3)  ;;  %vm410_vm1 = vcmask (!%p210_p3), 31744   ;;  %v9704_v9 = vsel (!%p210_p3), %vm988_vm0, %v7255_v4, 0  ;;  %s7523_s11 = sadd.s32 (!%p210_p3), 64, %s9676_s23  ;;  %p273_p6 = scmp.lt.s32.totalorder (!%p210_p3), %s9676_s23, 127 }
   0x9   : > { %9568 = vmatprep.subr.msk.bf16.mxu1 (!%p210_p3), %vm988_vm0, %v7255_v4  ;;  %9573 = vmatprep.subr.msk.bf16.mxu0 (!%p210_p3), %vm988_vm0, %v7387_v5  ;;  %v9707_v10 = vsel (!%p210_p3), %vm988_vm0, %v7387_v5, 0  ;;  %p259_p5 = scmp.lt.s32.totalorder (!%p210_p3), %s7523_s11, 191 }
   0xe   : > { %s253_s28 = scalar_select %p252_p4, %s9676_s23, 191 }
   0xf   : > { %s10670_s11 = smov (!%p259_p5, %s7523_s11), 191  ;;  %s10672_s23 = smov (!%p273_p6, %s9676_s23), 127 }
  0x10   : > { %s7218_s29 = sshll.u32 %s253_s28, 2  ;;  %s7220_s12 = sshll.u32 %s10670_s11, 2 }
  0x11   : > { %s9698_s6 = scalar_lea.vmem %s10660_s0, %s7218_s29  ;;  %s9884_s15 = scalar_lea.vmem %s10661_s1, %s7220_s12 }
  0x12   : > { %v7525_v6 = vld [vmem:[%s9698_s6] sm:$0xff]   ;;  %v7780_v7 = vld [vmem:[%s9698_s6 + $0x8] sm:$0xff]   ;;  %v7781_v8 = vld [vmem:[%s9698_s6 + $0x10] sm:$0xff]   ;;  %s7222_s30 = sshll.u32 %s10672_s23, 3 }
  0x13   : > { %v7526_v11 = vunpack.c.l.bf16 %v7525_v6  ;;  %v7527_v12 = vunpack.c.h.bf16 %v7525_v6  ;;  %v7530_v13 = vunpack.c.l.bf16 %v7780_v7  ;;  %v7531_v14 = vunpack.c.h.bf16 %v7780_v7  ;;  %v7782_v15 = vld [vmem:[%s9698_s6 + $0x18] sm:$0xff]   ;;  %v7783_v16 = vld [vmem:[%s9698_s6 + $0x20] sm:$0xff]   ;;  %v7784_v17 = vld [vmem:[%s9698_s6 + $0x28] sm:$0xff]   ;;  %s10498_s7 = scalar_lea.vmem %s10664_s4, %s7222_s30 }
  0x14   : > { %v7534_v18 = vunpack.c.l.bf16 %v7781_v8  ;;  %v7535_v19 = vunpack.c.h.bf16 %v7781_v8  ;;  %v7538_v20 = vunpack.c.l.bf16 %v7782_v15  ;;  %v7539_v21 = vunpack.c.h.bf16 %v7782_v15  ;;  %v7785_v22 = vld [vmem:[%s9698_s6 + $0x30] sm:$0xff]   ;;  %v7786_v23 = vld [vmem:[%s9698_s6 + $0x38] sm:$0xff]   ;;  %v7787_v24 = vld [vmem:[%s9698_s6 + $0x40] sm:$0xff]  }
  0x15   : > { %411 = vst.msk [vmem:[#allocation2] sm:$0xff] %vm410_vm1, %v7526_v11  ;;  %412 = vst.msk [vmem:[#allocation2 + $0x8] sm:$0xff] %vm410_vm1, %v7527_v12  ;;  %v7542_v25 = vunpack.c.l.bf16 %v7783_v16  ;;  %v7543_v26 = vunpack.c.h.bf16 %v7783_v16  ;;  %v7546_v27 = vunpack.c.l.bf16 %v7784_v17  ;;  %v7547_v28 = vunpack.c.h.bf16 %v7784_v17  ;;  %v7788_v29 = vld [vmem:[%s9698_s6 + $0x48] sm:$0xff]   ;;  %v7789_v30 = vld [vmem:[%s9698_s6 + $0x50] sm:$0xff]  }
  0x16   : > { %413 = vst.msk [vmem:[#allocation2 + $0x10] sm:$0xff] %vm410_vm1, %v7530_v13  ;;  %414 = vst.msk [vmem:[#allocation2 + $0x18] sm:$0xff] %vm410_vm1, %v7531_v14  ;;  %v7790_v31 = vld [vmem:[%s9698_s6 + $0x58] sm:$0xff]   ;;  %v7550_v32 = vunpack.c.l.bf16 %v7785_v22  ;;  %v7551_v33 = vunpack.c.h.bf16 %v7785_v22  ;;  %v7554_v34 = vunpack.c.l.bf16 %v7786_v23  ;;  %v7555_v35 = vunpack.c.h.bf16 %v7786_v23  ;;  %v7791_v36 = vld [vmem:[%s9698_s6 + $0x60] sm:$0xff]  }
  0x17   : > { %415 = vst.msk [vmem:[#allocation2 + $0x20] sm:$0xff] %vm410_vm1, %v7534_v18  ;;  %416 = vst.msk [vmem:[#allocation2 + $0x28] sm:$0xff] %vm410_vm1, %v7535_v19  ;;  %v7792_v37 = vld [vmem:[%s9698_s6 + $0x68] sm:$0xff]   ;;  %v7558_v38 = vunpack.c.l.bf16 %v7787_v24  ;;  %v7559_v39 = vunpack.c.h.bf16 %v7787_v24  ;;  %v7562_v40 = vunpack.c.l.bf16 %v7788_v29  ;;  %v7563_v41 = vunpack.c.h.bf16 %v7788_v29  ;;  %v7793_v42 = vld [vmem:[%s9698_s6 + $0x70] sm:$0xff]  }
  0x18   : > { %417 = vst.msk [vmem:[#allocation2 + $0x30] sm:$0xff] %vm410_vm1, %v7538_v20  ;;  %418 = vst.msk [vmem:[#allocation2 + $0x38] sm:$0xff] %vm410_vm1, %v7539_v21  ;;  %v7794_v43 = vld [vmem:[%s9698_s6 + $0x78] sm:$0xff]   ;;  %v7566_v44 = vunpack.c.l.bf16 %v7789_v30  ;;  %v7567_v45 = vunpack.c.h.bf16 %v7789_v30  ;;  %v7570_v46 = vunpack.c.l.bf16 %v7790_v31  ;;  %v7571_v47 = vunpack.c.h.bf16 %v7790_v31  ;;  %v7795_v48 = vld [vmem:[%s9698_s6 + $0x80] sm:$0xff]  }
  0x19   : > { %419 = vst.msk [vmem:[#allocation2 + $0x40] sm:$0xff] %vm410_vm1, %v7542_v25  ;;  %420 = vst.msk [vmem:[#allocation2 + $0x48] sm:$0xff] %vm410_vm1, %v7543_v26  ;;  %v7796_v49 = vld [vmem:[%s9698_s6 + $0x88] sm:$0xff]   ;;  %v7574_v50 = vunpack.c.l.bf16 %v7791_v36  ;;  %v7575_v51 = vunpack.c.h.bf16 %v7791_v36  ;;  %v7578_v52 = vunpack.c.l.bf16 %v7792_v37  ;;  %v7579_v53 = vunpack.c.h.bf16 %v7792_v37  ;;  %v7797_v54 = vld [vmem:[%s9698_s6 + $0x90] sm:$0xff]  }
  0x1a   : > { %421 = vst.msk [vmem:[#allocation2 + $0x50] sm:$0xff] %vm410_vm1, %v7546_v27  ;;  %422 = vst.msk [vmem:[#allocation2 + $0x58] sm:$0xff] %vm410_vm1, %v7547_v28  ;;  %v7798_v55 = vld [vmem:[%s9698_s6 + $0x98] sm:$0xff]   ;;  %v7582_v56 = vunpack.c.l.bf16 %v7793_v42  ;;  %v7583_v57 = vunpack.c.h.bf16 %v7793_v42  ;;  %v7586_v58 = vunpack.c.l.bf16 %v7794_v43  ;;  %v7587_v59 = vunpack.c.h.bf16 %v7794_v43  ;;  %v7799_v60 = vld [vmem:[%s9698_s6 + $0xa0] sm:$0xff]  }
  0x1b   : > { %423 = vst.msk [vmem:[#allocation2 + $0x60] sm:$0xff] %vm410_vm1, %v7550_v32  ;;  %424 = vst.msk [vmem:[#allocation2 + $0x68] sm:$0xff] %vm410_vm1, %v7551_v33  ;;  %v9752_v61 = vld [vmem:[%s9698_s6 + $0xa8] sm:$0xff]   ;;  %v7590_v62 = vunpack.c.l.bf16 %v7795_v48  ;;  %v7591_v63 = vunpack.c.h.bf16 %v7795_v48  ;;  %v7594_v0 = vunpack.c.l.bf16 %v7796_v49  ;;  %v7595_v1 = vunpack.c.h.bf16 %v7796_v49  ;;  %v9759_v2 = vld [vmem:[%s9698_s6 + $0xb0] sm:$0xff]  }
  0x1c   : > { %425 = vst.msk [vmem:[#allocation2 + $0x70] sm:$0xff] %vm410_vm1, %v7554_v34  ;;  %426 = vst.msk [vmem:[#allocation2 + $0x78] sm:$0xff] %vm410_vm1, %v7555_v35  ;;  %v9762_v4 = vld [vmem:[%s9698_s6 + $0xb8] sm:$0xff]   ;;  %v9765_v5 = vld [vmem:[%s9698_s6 + $0xc0] sm:$0xff]   ;;  %v7598_v11 = vunpack.c.l.bf16 %v7797_v54  ;;  %v7599_v12 = vunpack.c.h.bf16 %v7797_v54  ;;  %v7602_v13 = vunpack.c.l.bf16 %v7798_v55  ;;  %v7603_v14 = vunpack.c.h.bf16 %v7798_v55 }
  0x1d   : > { %427 = vst.msk [vmem:[#allocation2 + $0x80] sm:$0xff] %vm410_vm1, %v7558_v38  ;;  %428 = vst.msk [vmem:[#allocation2 + $0x88] sm:$0xff] %vm410_vm1, %v7559_v39  ;;  %v731_v6 = vld [vmem:[#allocation2] sm:$0xff]  ;;  %v732_v7 = vld [vmem:[#allocation2 + $0x8] sm:$0xff]  ;;  %v7606_v21 = vunpack.c.l.bf16 %v7799_v60  ;;  %v7607_v22 = vunpack.c.h.bf16 %v7799_v60  ;;  %v7610_v23 = vunpack.c.l.bf16 %v9752_v61  ;;  %v7611_v30 = vunpack.c.h.bf16 %v9752_v61 }
  0x1e   : > { %429 = vst.msk [vmem:[#allocation2 + $0x90] sm:$0xff] %vm410_vm1, %v7562_v40  ;;  %430 = vst.msk [vmem:[#allocation2 + $0x98] sm:$0xff] %vm410_vm1, %v7563_v41  ;;  %v3443_v8 = vld [vmem:[#allocation2 + $0x13] sm:$0xff]  ;;  %v9772_v15 = vld [vmem:[%s9698_s6 + $0xc8] sm:$0xff]   ;;  %v795_v17 = vpack.c.bf16 %v732_v7, %v731_v6  ;;  %v7614_v31 = vunpack.c.l.bf16 %v9759_v2  ;;  %v7615_v36 = vunpack.c.h.bf16 %v9759_v2  ;;  %v7618_v37 = vunpack.c.l.bf16 %v9762_v4 }
  0x1f   : > { %431 = vst.msk [vmem:[#allocation2 + $0xa0] sm:$0xff] %vm410_vm1, %v7566_v44  ;;  %432 = vst.msk [vmem:[#allocation2 + $0xa8] sm:$0xff] %vm410_vm1, %v7567_v45  ;;  %v9775_v16 = vld [vmem:[%s9698_s6 + $0xd0] sm:$0xff]   ;;  %v3444_v18 = vld [vmem:[#allocation2 + $0x1b] sm:$0xff]  ;;  %v7619_v38 = vunpack.c.h.bf16 %v9762_v4  ;;  %v7622_v42 = vunpack.c.l.bf16 %v9765_v5  ;;  %v7623_v43 = vunpack.c.h.bf16 %v9765_v5  ;;  %v7626_v49 = vunpack.c.l.bf16 %v9772_v15 }
  0x20   : > { %433 = vst.msk [vmem:[#allocation2 + $0xb0] sm:$0xff] %vm410_vm1, %v7570_v46  ;;  %434 = vst.msk [vmem:[#allocation2 + $0xb8] sm:$0xff] %vm410_vm1, %v7571_v47  ;;  %v733_v19 = vld [vmem:[#allocation2 + $0x10] sm:$0xff]  ;;  %v734_v20 = vld [vmem:[#allocation2 + $0x18] sm:$0xff]  ;;  %v3507_v25 = vpack.c.bf16 %v3444_v18, %v3443_v8  ;;  %8141 = vmatprep.mubr.msk.bf16.mxu1 %vm410_vm1, %v795_v17  ;;  %v7631_v54 = vunpack.c.h.bf16 %v9775_v16 }
  0x21   : > { %435 = vst.msk [vmem:[#allocation2 + $0xc0] sm:$0xff] %vm410_vm1, %v7574_v50  ;;  %436 = vst.msk [vmem:[#allocation2 + $0xc8] sm:$0xff] %vm410_vm1, %v7575_v51  ;;  %v9783_v24 = vld [vmem:[%s9698_s6 + $0xd8] sm:$0xff]   ;;  %v796_v26 = vpack.c.bf16 %v734_v20, %v733_v19  ;;  %v3445_v27 = vld [vmem:[#allocation2 + $0x23] sm:$0xff]  ;;  %v7627_v50 = vunpack.c.h.bf16 %v9772_v15  ;;  %v7630_v51 = vunpack.c.l.bf16 %v9775_v16 }
  0x22   : > { %437 = vst.msk [vmem:[#allocation2 + $0xd0] sm:$0xff] %vm410_vm1, %v7578_v52  ;;  %438 = vst.msk [vmem:[#allocation2 + $0xd8] sm:$0xff] %vm410_vm1, %v7579_v53  ;;  %v3446_v28 = vld [vmem:[#allocation2 + $0x2b] sm:$0xff]  ;;  %v735_v29 = vld [vmem:[#allocation2 + $0x20] sm:$0xff]  ;;  %8405 = vmatprep.mubr.msk.bf16.mxu0 %vm410_vm1, %v3507_v25  ;;  %v7634_v55 = vunpack.c.l.bf16 %v9783_v24 }
  0x23   : > { %439 = vst.msk [vmem:[#allocation2 + $0xe0] sm:$0xff] %vm410_vm1, %v7582_v56  ;;  %440 = vst.msk [vmem:[#allocation2 + $0xe8] sm:$0xff] %vm410_vm1, %v7583_v57  ;;  %v3508_v32 = vpack.c.bf16 %v3446_v28, %v3445_v27  ;;  %v736_v33 = vld [vmem:[#allocation2 + $0x28] sm:$0xff]  ;;  %v3447_v34 = vld [vmem:[#allocation2 + $0x33] sm:$0xff]  ;;  %8142 = vmatmul.mubr.msk.bf16.vlgmr.msra.gmra.mrb[0].mxu1 %vm410_vm1, %v796_v26 }
  0x24   : > { %441 = vst.msk [vmem:[#allocation2 + $0xf0] sm:$0xff] %vm410_vm1, %v7586_v58  ;;  %442 = vst.msk [vmem:[#allocation2 + $0xf8] sm:$0xff] %vm410_vm1, %v7587_v59  ;;  %v3448_v35 = vld [vmem:[#allocation2 + $0x3b] sm:$0xff]  ;;  %v797_v39 = vpack.c.bf16 %v736_v33, %v735_v29  ;;  %v9803_v41 = vld [vmem:[%s10662_s2 + $0xc] sm:$0x3]  ;;  %8206 = vmatpush3.bf16.msra.mxu1 %v9704_v9  ;;  %v7635_v58 = vunpack.c.h.bf16 %v9783_v24 }
  0x25   : > { %443 = vst.msk [vmem:[#allocation2 + $0x100] sm:$0xff] %vm410_vm1, %v7590_v62  ;;  %444 = vst.msk [vmem:[#allocation2 + $0x108] sm:$0xff] %vm410_vm1, %v7591_v63  ;;  %v3509_v40 = vpack.c.bf16 %v3448_v35, %v3447_v34  ;;  %v7807_v44 = vld [vmem:[%s9698_s6 + $0xe0] sm:$0xff]   ;;  %v7808_v45 = vld [vmem:[%s9698_s6 + $0xe8] sm:$0xff]   ;;  %8406 = vmatmul.mubr.msk.bf16.vlgmr.msra.gmra.mrb[0].mxu0 %vm410_vm1, %v3508_v32 }
  0x26   : > { %445 = vst.msk [vmem:[#allocation2 + $0x110] sm:$0xff] %vm410_vm1, %v7594_v0  ;;  %446 = vst.msk [vmem:[#allocation2 + $0x118] sm:$0xff] %vm410_vm1, %v7595_v1  ;;  %v737_v46 = vld [vmem:[#allocation2 + $0x30] sm:$0xff]  ;;  %v738_v47 = vld [vmem:[#allocation2 + $0x38] sm:$0xff]  ;;  %8145 = vmatprep.mubr.msk.bf16.mxu1 %vm410_vm1, %v797_v39  ;;  %8470 = vmatpush3.bf16.msra.mxu0 %v9707_v10  ;;  %v7638_v59 = vunpack.c.l.bf16 %v7807_v44  ;;  %v7639_v60 = vunpack.c.h.bf16 %v7807_v44  ;;  %v7642_v10 = vunpack.c.l.bf16 %v7808_v45  ;;  %v7643_v62 = vunpack.c.h.bf16 %v7808_v45 }
  0x27   : > { %447 = vst.msk [vmem:[#allocation2 + $0x120] sm:$0xff] %vm410_vm1, %v7598_v11  ;;  %448 = vst.msk [vmem:[#allocation2 + $0x128] sm:$0xff] %vm410_vm1, %v7599_v12  ;;  %v3449_v48 = vld [vmem:[#allocation2 + $0x43] sm:$0xff]  ;;  %8409 = vmatprep.mubr.msk.bf16.mxu0 %vm410_vm1, %v3509_v40  ;;  %v3450_v9 = vld [vmem:[#allocation2 + $0x4b] sm:$0xff]  ;;  %v798_v61 = vpack.c.bf16 %v738_v47, %v737_v46  ;;  %9574 = vmatprep.subr.msk.bf16.mxu0 %vm988_vm0, %v9803_v41 }
  0x28   : > { %449 = vst.msk [vmem:[#allocation2 + $0x130] sm:$0xff] %vm410_vm1, %v7602_v13  ;;  %450 = vst.msk [vmem:[#allocation2 + $0x138] sm:$0xff] %vm410_vm1, %v7603_v14  ;;  %v739_v52 = vld [vmem:[#allocation2 + $0x40] sm:$0xff]  ;;  %v740_v53 = vld [vmem:[#allocation2 + $0x48] sm:$0xff]  ;;  %v3510_v63 = vpack.c.bf16 %v3450_v9, %v3449_v48 }
  0x29   : > { %451 = vst.msk [vmem:[#allocation2 + $0x140] sm:$0xff] %vm410_vm1, %v7606_v21  ;;  %452 = vst.msk [vmem:[#allocation2 + $0x148] sm:$0xff] %vm410_vm1, %v7607_v22  ;;  %v3451_v56 = vld [vmem:[#allocation2 + $0x53] sm:$0xff]  ;;  %v3452_v57 = vld [vmem:[#allocation2 + $0x5b] sm:$0xff]  ;;  %v799_v0 = vpack.c.bf16 %v740_v53, %v739_v52 }
  0x2a   : > { %453 = vst.msk [vmem:[#allocation2 + $0x150] sm:$0xff] %vm410_vm1, %v7610_v23  ;;  %454 = vst.msk [vmem:[#allocation2 + $0x158] sm:$0xff] %vm410_vm1, %v7611_v30  ;;  %v3511_v1 = vpack.c.bf16 %v3452_v57, %v3451_v56  ;;  %v741_v2 = vld [vmem:[#allocation2 + $0x50] sm:$0xff]  ;;  %v742_v4 = vld [vmem:[#allocation2 + $0x58] sm:$0xff] }
  0x2b   : > { %455 = vst.msk [vmem:[#allocation2 + $0x160] sm:$0xff] %vm410_vm1, %v7614_v31  ;;  %456 = vst.msk [vmem:[#allocation2 + $0x168] sm:$0xff] %vm410_vm1, %v7615_v36  ;;  %8146 = vmatmul.mubr.msk.bf16.gmra.mrb[4].mxu1 %vm410_vm1, %v798_v61  ;;  %v3453_v5 = vld [vmem:[#allocation2 + $0x63] sm:$0xff]  ;;  %v3454_v6 = vld [vmem:[#allocation2 + $0x6b] sm:$0xff]  ;;  %v800_v13 = vpack.c.bf16 %v742_v4, %v741_v2 }
  0x2c   : > { %457 = vst.msk [vmem:[#allocation2 + $0x170] sm:$0xff] %vm410_vm1, %v7618_v37  ;;  %458 = vst.msk [vmem:[#allocation2 + $0x178] sm:$0xff] %vm410_vm1, %v7619_v38  ;;  %8149 = vmatprep.mubr.msk.bf16.mxu1 %vm410_vm1, %v799_v0  ;;  %v743_v7 = vld [vmem:[#allocation2 + $0x60] sm:$0xff]  ;;  %v744_v8 = vld [vmem:[#allocation2 + $0x68] sm:$0xff]  ;;  %v3512_v14 = vpack.c.bf16 %v3454_v6, %v3453_v5 }
  0x2d   : > { %459 = vst.msk [vmem:[#allocation2 + $0x180] sm:$0xff] %vm410_vm1, %v7622_v42  ;;  %460 = vst.msk [vmem:[#allocation2 + $0x188] sm:$0xff] %vm410_vm1, %v7623_v43  ;;  %8410 = vmatmul.mubr.msk.bf16.gmra.mrb[4].mxu0 %vm410_vm1, %v3510_v63  ;;  %v3455_v11 = vld [vmem:[#allocation2 + $0x73] sm:$0xff]  ;;  %v3456_v12 = vld [vmem:[#allocation2 + $0x7b] sm:$0xff]  ;;  %v801_v15 = vpack.c.bf16 %v744_v8, %v743_v7 }
  0x2e   : > { %461 = vst.msk [vmem:[#allocation2 + $0x190] sm:$0xff] %vm410_vm1, %v7626_v49  ;;  %462 = vst.msk [vmem:[#allocation2 + $0x198] sm:$0xff] %vm410_vm1, %v7627_v50  ;;  %8413 = vmatprep.mubr.msk.bf16.mxu0 %vm410_vm1, %v3511_v1  ;;  %v3513_v16 = vpack.c.bf16 %v3456_v12, %v3455_v11  ;;  %v745_v17 = vld [vmem:[#allocation2 + $0x70] sm:$0xff]  ;;  %v746_v18 = vld [vmem:[#allocation2 + $0x78] sm:$0xff] }
  0x2f   : > { %463 = vst.msk [vmem:[#allocation2 + $0x1a0] sm:$0xff] %vm410_vm1, %v7630_v51  ;;  %464 = vst.msk [vmem:[#allocation2 + $0x1a8] sm:$0xff] %vm410_vm1, %v7631_v54  ;;  %v3457_v19 = vld [vmem:[#allocation2 + $0x83] sm:$0xff]  ;;  %v3458_v20 = vld [vmem:[#allocation2 + $0x8b] sm:$0xff]  ;;  %v802_v25 = vpack.c.bf16 %v746_v18, %v745_v17 }
  0x30   : > { %465 = vst.msk [vmem:[#allocation2 + $0x1b0] sm:$0xff] %vm410_vm1, %v7634_v55  ;;  %466 = vst.msk [vmem:[#allocation2 + $0x1b8] sm:$0xff] %vm410_vm1, %v7635_v58  ;;  %v747_v21 = vld [vmem:[#allocation2 + $0x80] sm:$0xff]  ;;  %v748_v22 = vld [vmem:[#allocation2 + $0x88] sm:$0xff]  ;;  %v3514_v26 = vpack.c.bf16 %v3458_v20, %v3457_v19 }
  0x31   : > { %467 = vst.msk [vmem:[#allocation2 + $0x1c0] sm:$0xff] %vm410_vm1, %v7638_v59  ;;  %468 = vst.msk [vmem:[#allocation2 + $0x1c8] sm:$0xff] %vm410_vm1, %v7639_v60  ;;  %v3459_v23 = vld [vmem:[#allocation2 + $0x93] sm:$0xff]  ;;  %v3460_v24 = vld [vmem:[#allocation2 + $0x9b] sm:$0xff]  ;;  %v803_v27 = vpack.c.bf16 %v748_v22, %v747_v21 }
  0x32   : > { %469 = vst.msk [vmem:[#allocation2 + $0x1d0] sm:$0xff] %vm410_vm1, %v7642_v10  ;;  %470 = vst.msk [vmem:[#allocation2 + $0x1d8] sm:$0xff] %vm410_vm1, %v7643_v62  ;;  %v3515_v28 = vpack.c.bf16 %v3460_v24, %v3459_v23  ;;  %v749_v29 = vld [vmem:[#allocation2 + $0x90] sm:$0xff]  ;;  %v750_v30 = vld [vmem:[#allocation2 + $0x98] sm:$0xff] }
  0x33   : > { %8150 = vmatmul.mubr.msk.bf16.gmra.mrb[8].mxu1 %vm410_vm1, %v800_v13  ;;  %v3461_v31 = vld [vmem:[#allocation2 + $0xa3] sm:$0xff]  ;;  %v3462_v32 = vld [vmem:[#allocation2 + $0xab] sm:$0xff]  ;;  %v3463_v35 = vld [vmem:[#allocation2 + $0xb3] sm:$0xff]  ;;  %v804_v37 = vpack.c.bf16 %v750_v30, %v749_v29 }
  0x34   : > { %8153 = vmatprep.mubr.msk.bf16.mxu1 %vm410_vm1, %v801_v15  ;;  %v751_v33 = vld [vmem:[#allocation2 + $0xa0] sm:$0xff]  ;;  %v752_v34 = vld [vmem:[#allocation2 + $0xa8] sm:$0xff]  ;;  %v3516_v38 = vpack.c.bf16 %v3462_v32, %v3461_v31  ;;  %v753_v42 = vld [vmem:[#allocation2 + $0xb0] sm:$0xff] }
  0x35   : > { %8414 = vmatmul.mubr.msk.bf16.gmra.mrb[8].mxu0 %vm410_vm1, %v3512_v14  ;;  %v3464_v36 = vld [vmem:[#allocation2 + $0xbb] sm:$0xff]  ;;  %v805_v39 = vpack.c.bf16 %v752_v34, %v751_v33  ;;  %v3465_v44 = vld [vmem:[#allocation2 + $0xc3] sm:$0xff]  ;;  %v3466_v45 = vld [vmem:[#allocation2 + $0xcb] sm:$0xff] }
  0x36   : > { %8417 = vmatprep.mubr.msk.bf16.mxu0 %vm410_vm1, %v3513_v16  ;;  %v3517_v40 = vpack.c.bf16 %v3464_v36, %v3463_v35  ;;  %v754_v43 = vld [vmem:[#allocation2 + $0xb8] sm:$0xff]  ;;  %v755_v46 = vld [vmem:[#allocation2 + $0xc0] sm:$0xff]  ;;  %v756_v47 = vld [vmem:[#allocation2 + $0xc8] sm:$0xff]  ;;  %v3518_v9 = vpack.c.bf16 %v3466_v45, %v3465_v44 }
  0x37   : > { %v3467_v48 = vld [vmem:[#allocation2 + $0xd3] sm:$0xff]  ;;  %v3468_v49 = vld [vmem:[#allocation2 + $0xdb] sm:$0xff]  ;;  %v806_v50 = vpack.c.bf16 %v754_v43, %v753_v42  ;;  %v807_v52 = vpack.c.bf16 %v756_v47, %v755_v46  ;;  %v9860_v59 = vld [vmem:[%s10662_s2 + $0x4] sm:$0x3] }
  0x38   : > { %v7809_v51 = vld [vmem:[%s9698_s6 + $0xf0] sm:$0xff]   ;;  %v7810_v55 = vld [vmem:[%s9698_s6 + $0xf8] sm:$0xff]   ;;  %v3519_v56 = vpack.c.bf16 %v3468_v49, %v3467_v48  ;;  %9569 = vmatprep.subr.msk.bf16.mxu1 %vm988_vm0, %v9860_v59  ;;  %v3469_v10 = vld [vmem:[#allocation2 + $0xe3] sm:$0xff] }
  0x39   : > { %v7646_v53 = vunpack.c.l.bf16 %v7809_v51  ;;  %v7647_v54 = vunpack.c.h.bf16 %v7809_v51  ;;  %v7650_v57 = vunpack.c.l.bf16 %v7810_v55  ;;  %v7651_v58 = vunpack.c.h.bf16 %v7810_v55  ;;  %v757_v60 = vld [vmem:[#allocation2 + $0xd0] sm:$0xff]  ;;  %v758_v61 = vld [vmem:[#allocation2 + $0xd8] sm:$0xff]  ;;  %v759_v63 = vld [vmem:[#allocation2 + $0xe0] sm:$0xff] }
  0x3a   : > { %v3470_v62 = vld [vmem:[#allocation2 + $0xeb] sm:$0xff]  ;;  %v3471_v1 = vld [vmem:[#allocation2 + $0xf3] sm:$0xff]  ;;  %v3472_v2 = vld [vmem:[#allocation2 + $0xfb] sm:$0xff]  ;;  %v808_v4 = vpack.c.bf16 %v758_v61, %v757_v60 }
  0x3b   : > { %8154 = vmatmul.mubr.msk.bf16.gmra.mrb[12].mxu1 %vm410_vm1, %v802_v25  ;;  %471 = vst.msk [vmem:[#allocation2 + $0x1e0] sm:$0xff] %vm410_vm1, %v7646_v53  ;;  %472 = vst.msk [vmem:[#allocation2 + $0x1e8] sm:$0xff] %vm410_vm1, %v7647_v54  ;;  %v760_v0 = vld [vmem:[#allocation2 + $0xe8] sm:$0xff]  ;;  %v3520_v5 = vpack.c.bf16 %v3470_v62, %v3469_v10  ;;  %v3521_v7 = vpack.c.bf16 %v3472_v2, %v3471_v1  ;;  %v761_v8 = vld [vmem:[#allocation2 + $0xf0] sm:$0xff] }
  0x3c   : > { %8157 = vmatprep.mubr.msk.bf16.mxu1 %vm410_vm1, %v803_v27  ;;  %473 = vst.msk [vmem:[#allocation2 + $0x1f0] sm:$0xff] %vm410_vm1, %v7650_v57  ;;  %474 = vst.msk [vmem:[#allocation2 + $0x1f8] sm:$0xff] %vm410_vm1, %v7651_v58  ;;  %v809_v6 = vpack.c.bf16 %v760_v0, %v759_v63  ;;  %v762_v11 = vld [vmem:[#allocation2 + $0xf8] sm:$0xff]  ;;  %v3473_v12 = vld [vmem:[#allocation2 + $0x103] sm:$0xff] }
  0x3d   : > { %8418 = vmatmul.mubr.msk.bf16.gmra.mrb[12].mxu0 %vm410_vm1, %v3514_v26  ;;  %v3474_v13 = vld [vmem:[#allocation2 + $0x10b] sm:$0xff]  ;;  %v763_v14 = vld [vmem:[#allocation2 + $0x100] sm:$0xff]  ;;  %v4121_v16 = vld [vmem:[#allocation2 + $0x14] sm:$0xff]  ;;  %v810_v18 = vpack.c.bf16 %v762_v11, %v761_v8 }
  0x3e   : > { %8421 = vmatprep.mubr.msk.bf16.mxu0 %vm410_vm1, %v3515_v28  ;;  %v764_v15 = vld [vmem:[#allocation2 + $0x108] sm:$0xff]  ;;  %v4122_v17 = vld [vmem:[#allocation2 + $0x1c] sm:$0xff]  ;;  %v3522_v19 = vpack.c.bf16 %v3474_v13, %v3473_v12  ;;  %v765_v21 = vld [vmem:[#allocation2 + $0x110] sm:$0xff] }
  0x3f   : > { %v811_v20 = vpack.c.bf16 %v764_v15, %v763_v14  ;;  %v766_v22 = vld [vmem:[#allocation2 + $0x118] sm:$0xff]  ;;  %v4123_v23 = vld [vmem:[#allocation2 + $0x24] sm:$0xff]  ;;  %v4124_v24 = vld [vmem:[#allocation2 + $0x2c] sm:$0xff]  ;;  %v4185_v28 = vpack.c.bf16 %v4122_v17, %v4121_v16 }
  0x40   : > { %v767_v25 = vld [vmem:[#allocation2 + $0x120] sm:$0xff]  ;;  %v768_v26 = vld [vmem:[#allocation2 + $0x128] sm:$0xff]  ;;  %v4125_v27 = vld [vmem:[#allocation2 + $0x34] sm:$0xff] }
  0x41   : > { %v4126_v29 = vld [vmem:[#allocation2 + $0x3c] sm:$0xff]  ;;  %v769_v30 = vld [vmem:[#allocation2 + $0x130] sm:$0xff]  ;;  %v4127_v32 = vld [vmem:[#allocation2 + $0x44] sm:$0xff]  ;;  %v813_v42 = vpack.c.bf16 %v768_v26, %v767_v25 }
  0x42   : > { %v770_v31 = vld [vmem:[#allocation2 + $0x138] sm:$0xff]  ;;  %v4128_v33 = vld [vmem:[#allocation2 + $0x4c] sm:$0xff]  ;;  %v771_v34 = vld [vmem:[#allocation2 + $0x140] sm:$0xff]  ;;  %v9893_v43 = vpack.c.bf16 %v4126_v29, %v4125_v27 }
  0x43   : > { %8158 = vmatmul.mubr.msk.bf16.gmra.mrb[16].mxu1 %vm410_vm1, %v804_v37  ;;  %v772_v35 = vld [vmem:[#allocation2 + $0x148] sm:$0xff]  ;;  %v4129_v36 = vld [vmem:[#allocation2 + $0x54] sm:$0xff]  ;;  %v4130_v37 = vld [vmem:[#allocation2 + $0x5c] sm:$0xff]  ;;  %v814_v44 = vpack.c.bf16 %v770_v31, %v769_v30  ;;  %v9895_v45 = vpack.c.bf16 %v4128_v33, %v4127_v32 }
  0x44   : > { %8161 = vmatprep.mubr.msk.bf16.mxu1 %vm410_vm1, %v805_v39  ;;  %v812_v39 = vpack.c.bf16 %v766_v22, %v765_v21  ;;  %v815_v46 = vpack.c.bf16 %v772_v35, %v771_v34  ;;  %v9897_v47 = vpack.c.bf16 %v4130_v37, %v4129_v36  ;;  %v7653_v48 = vld [vmem:[%s9884_s15] sm:$0xff]   ;;  %v774_v51 = vld [vmem:[#allocation2 + $0x158] sm:$0xff]  ;;  %v4132_v53 = vld [vmem:[#allocation2 + $0x6c] sm:$0xff] }
  0x45   : > { %8422 = vmatmul.mubr.msk.bf16.gmra.mrb[16].mxu0 %vm410_vm1, %v3516_v38  ;;  %v5058_v38 = vsel %vm988_vm0, %v9803_v41, 0  ;;  %v7654_v49 = vunpack.c.l.bf16 %v7653_v48  ;;  %v773_v41 = vld [vmem:[#allocation2 + $0x150] sm:$0xff]  ;;  %v775_v54 = vld [vmem:[#allocation2 + $0x160] sm:$0xff]  ;;  %v776_v55 = vld [vmem:[#allocation2 + $0x168] sm:$0xff]  ;;  %v7655_v58 = vunpack.c.h.bf16 %v7653_v48 }
  0x46   : > { %8425 = vmatprep.mubr.msk.bf16.mxu0 %vm410_vm1, %v3517_v40  ;;  %v9891_v40 = vpack.c.bf16 %v4124_v24, %v4123_v23  ;;  %v4134_v57 = vld [vmem:[#allocation2 + $0x7c] sm:$0xff]  ;;  %v816_v61 = vpack.c.bf16 %v774_v51, %v773_v41  ;;  %v817_v62 = vpack.c.bf16 %v776_v55, %v775_v54  ;;  %v777_v0 = vld [vmem:[#allocation2 + $0x170] sm:$0xff]  ;;  %v4135_v2 = vld [vmem:[#allocation2 + $0x84] sm:$0xff] }
  0x47   : > { %603 = vst.msk [vmem:[#allocation2 + $0x200] sm:$0xff] %vm410_vm1, %v7654_v49  ;;  %604 = vst.msk [vmem:[#allocation2 + $0x208] sm:$0xff] %vm410_vm1, %v7655_v58  ;;  %v778_v1 = vld [vmem:[#allocation2 + $0x178] sm:$0xff]  ;;  %v781_v15 = vld [vmem:[#allocation2 + $0x190] sm:$0xff] }
  0x48   : > { %v4138_v8 = vld [vmem:[#allocation2 + $0x9c] sm:$0xff]  ;;  %v818_v11 = vpack.c.bf16 %v778_v1, %v777_v0  ;;  %v4139_v17 = vld [vmem:[#allocation2 + $0xa4] sm:$0xff]  ;;  %v4141_v21 = vld [vmem:[#allocation2 + $0xb4] sm:$0xff] }
  0x49   : > { %v782_v16 = vld [vmem:[#allocation2 + $0x198] sm:$0xff]  ;;  %v785_v27 = vld [vmem:[#allocation2 + $0x1b0] sm:$0xff]  ;;  %v4143_v29 = vld [vmem:[#allocation2 + $0xc4] sm:$0xff] }
  0x4a   : > { %v4142_v22 = vld [vmem:[#allocation2 + $0xbc] sm:$0xff]  ;;  %v820_v23 = vpack.c.bf16 %v782_v16, %v781_v15  ;;  %v4144_v30 = vld [vmem:[#allocation2 + $0xcc] sm:$0xff]  ;;  %v4145_v33 = vld [vmem:[#allocation2 + $0xd4] sm:$0xff] }
  0x4b   : > { %8162 = vmatmul.mubr.msk.bf16.gmra.mrb[20].mxu1 %vm410_vm1, %v806_v50  ;;  %v9909_v50 = vld [vmem:[%s9884_s15 + $0x8] sm:$0xff]   ;;  %v9948_v26 = vpack.c.bf16 %v4142_v22, %v4141_v21  ;;  %v787_v31 = vld [vmem:[#allocation2 + $0x1c0] sm:$0xff]  ;;  %v9956_v36 = vpack.c.bf16 %v4144_v30, %v4143_v29  ;;  %v4149_v41 = vld [vmem:[#allocation2 + $0xf4] sm:$0xff]  ;;  %v2346_v21 = vsel %vm988_vm0, %v9860_v59, 0 }
  0x4c   : > { %8165 = vmatprep.mubr.msk.bf16.mxu1 %vm410_vm1, %v807_v52  ;;  %v9917_v52 = vld [vmem:[%s10662_s2 + $0xe] sm:$0x3]  ;;  %v7658_v60 = vunpack.c.l.bf16 %v9909_v50  ;;  %v4146_v34 = vld [vmem:[#allocation2 + $0xdc] sm:$0xff]  ;;  %v4151_v58 = vld [vmem:[#allocation2 + $0x104] sm:$0xff] }
  0x4d   : > { %8426 = vmatmul.mubr.msk.bf16.gmra.mrb[20].mxu0 %vm410_vm1, %v3518_v9  ;;  %v4131_v9 = vld [vmem:[#allocation2 + $0x64] sm:$0xff]  ;;  %v4150_v51 = vld [vmem:[#allocation2 + $0xfc] sm:$0xff]  ;;  %v4153_v0 = vld [vmem:[#allocation2 + $0x114] sm:$0xff] }
  0x4e   : > { %8429 = vmatprep.mubr.msk.bf16.mxu0 %vm410_vm1, %v3519_v56  ;;  %v4133_v56 = vld [vmem:[#allocation2 + $0x74] sm:$0xff]  ;;  %v9924_v10 = vpack.c.bf16 %v4132_v53, %v4131_v9  ;;  %605 = vst.msk [vmem:[#allocation2 + $0x210] sm:$0xff] %vm410_vm1, %v7658_v60  ;;  %v788_v32 = vld [vmem:[#allocation2 + $0x1c8] sm:$0xff]  ;;  %v791_v48 = vld [vmem:[#allocation2 + $0x1e0] sm:$0xff]  ;;  %v9968_v55 = vpack.c.bf16 %v4150_v51, %v4149_v41 }
  0x4f   : > { %v9928_v63 = vpack.c.bf16 %v4134_v57, %v4133_v56  ;;  %v823_v37 = vpack.c.bf16 %v788_v32, %v787_v31  ;;  %v792_v49 = vld [vmem:[#allocation2 + $0x1e8] sm:$0xff]  ;;  %v793_v56 = vld [vmem:[#allocation2 + $0x1f0] sm:$0xff]  ;;  %v794_v57 = vld [vmem:[#allocation2 + $0x1f8] sm:$0xff] }
  0x50   : > { %v825_v54 = vpack.c.bf16 %v792_v49, %v791_v48  ;;  %v4152_v60 = vld [vmem:[#allocation2 + $0x10c] sm:$0xff]  ;;  %v4154_v1 = vld [vmem:[#allocation2 + $0x11c] sm:$0xff]  ;;  %v4159_v29 = vld [vmem:[#allocation2 + $0x144] sm:$0xff] }
  0x51   : > { %v1413_v15 = vld [vmem:[#allocation2 + $0x21] sm:$0xff]  ;;  %v1414_v16 = vld [vmem:[#allocation2 + $0x29] sm:$0xff]  ;;  %v4161_v32 = vld [vmem:[#allocation2 + $0x154] sm:$0xff] }
  0x52   : > { %v1475_v22 = vpack.c.bf16 %v1414_v16, %v1413_v15  ;;  %v4160_v59 = vld [vmem:[#allocation2 + $0x14c] sm:$0xff]  ;;  %v1417_v30 = vld [vmem:[#allocation2 + $0x41] sm:$0xff]  ;;  %v4165_v51 = vld [vmem:[#allocation2 + $0x174] sm:$0xff] }
  0x53   : > { %8166 = vmatmul.mubr.msk.bf16.gmra.mrb[24].mxu1 %vm410_vm1, %v808_v4  ;;  %v4136_v4 = vld [vmem:[#allocation2 + $0x8c] sm:$0xff]  ;;  %v1421_v49 = vld [vmem:[#allocation2 + $0x61] sm:$0xff] }
  0x54   : > { %8169 = vmatprep.mubr.msk.bf16.mxu1 %vm410_vm1, %v809_v6  ;;  %v780_v6 = vld [vmem:[#allocation2 + $0x188] sm:$0xff]  ;;  %v9936_v12 = vpack.c.bf16 %v4136_v4, %v4135_v2  ;;  %v826_v2 = vpack.c.bf16 %v794_v57, %v793_v56  ;;  %v9976_v4 = vpack.c.bf16 %v4152_v60, %v4151_v58  ;;  %v1423_v60 = vld [vmem:[#allocation2 + $0x71] sm:$0xff] }
  0x55   : > { %8430 = vmatmul.mubr.msk.bf16.gmra.mrb[24].mxu0 %vm410_vm1, %v3520_v5  ;;  %v779_v5 = vld [vmem:[#allocation2 + $0x180] sm:$0xff]  ;;  %v1418_v31 = vld [vmem:[#allocation2 + $0x49] sm:$0xff]  ;;  %v1427_v16 = vld [vmem:[#allocation2 + $0x91] sm:$0xff] }
  0x56   : > { %8433 = vmatprep.mubr.msk.bf16.mxu0 %vm410_vm1, %v3521_v7  ;;  %v4137_v7 = vld [vmem:[#allocation2 + $0x94] sm:$0xff]  ;;  %v819_v13 = vpack.c.bf16 %v780_v6, %v779_v5  ;;  %v9978_v6 = vpack.c.bf16 %v4154_v1, %v4153_v0  ;;  %v4164_v48 = vld [vmem:[#allocation2 + $0x16c] sm:$0xff]  ;;  %v1425_v1 = vld [vmem:[#allocation2 + $0x81] sm:$0xff] }
  0x57   : > { %v9938_v14 = vpack.c.bf16 %v4138_v8, %v4137_v7  ;;  %v1411_v7 = vld [vmem:[#allocation2 + $0x11] sm:$0xff]  ;;  %v1412_v8 = vld [vmem:[#allocation2 + $0x19] sm:$0xff]  ;;  %v1422_v41 = vld [vmem:[#allocation2 + $0x69] sm:$0xff] }
  0x58   : > { %v1479_v57 = vpack.c.bf16 %v1422_v41, %v1421_v49  ;;  %v4168_v0 = vld [vmem:[#allocation2 + $0x18c] sm:$0xff] }
  0x5b   : > { %8170 = vmatmul.mubr.msk.bf16.gmra.mrb[28].mxu1 %vm410_vm1, %v810_v18  ;;  %v4140_v18 = vld [vmem:[#allocation2 + $0xac] sm:$0xff] }
  0x5c   : > { %8173 = vmatprep.mubr.msk.bf16.mxu1 %vm410_vm1, %v811_v20  ;;  %v784_v20 = vld [vmem:[#allocation2 + $0x1a8] sm:$0xff]  ;;  %v9946_v24 = vpack.c.bf16 %v4140_v18, %v4139_v17  ;;  %v4157_v17 = vld [vmem:[#allocation2 + $0x134] sm:$0xff]  ;;  %v4158_v18 = vld [vmem:[#allocation2 + $0x13c] sm:$0xff] }
  0x5d   : > { %8434 = vmatmul.mubr.msk.bf16.gmra.mrb[28].mxu0 %vm410_vm1, %v3522_v19  ;;  %v783_v19 = vld [vmem:[#allocation2 + $0x1a0] sm:$0xff] }
  0x5e   : > { %8471 = vmatprep.mubr.msk.bf16.mxu0 %vm410_vm1, %v4185_v28  ;;  %v821_v25 = vpack.c.bf16 %v784_v20, %v783_v19  ;;  %v786_v28 = vld [vmem:[#allocation2 + $0x1b8] sm:$0xff]  ;;  %v1474_v19 = vpack.c.bf16 %v1412_v8, %v1411_v7 }
  0x5f   : > { %v822_v35 = vpack.c.bf16 %v786_v28, %v785_v27  ;;  %v1415_v27 = vld [vmem:[#allocation2 + $0x31] sm:$0xff]  ;;  %v1416_v28 = vld [vmem:[#allocation2 + $0x39] sm:$0xff] }
  0x60   : > { %v4170_v7 = vld [vmem:[#allocation2 + $0x19c] sm:$0xff] }
  0x63   : > { %8174 = vmatmul.mubr.msk.bf16.gmra.mrb[32].mxu1 %vm410_vm1, %v812_v39  ;;  %v789_v39 = vld [vmem:[#allocation2 + $0x1d0] sm:$0xff] }
  0x64   : > { %8177 = vmatprep.mubr.msk.bf16.mxu1 %vm410_vm1, %v813_v42  ;;  %v790_v42 = vld [vmem:[#allocation2 + $0x1d8] sm:$0xff] }
  0x65   : > { %8472 = vmatmul.mubr.msk.bf16.vlgmr.msra.gmra.mrb[0].mxu0 %vm410_vm1, %v9891_v40  ;;  %v824_v9 = vpack.c.bf16 %v790_v42, %v789_v39  ;;  %v1419_v42 = vld [vmem:[#allocation2 + $0x51] sm:$0xff] }
  0x66   : > { %8475 = vmatprep.mubr.msk.bf16.mxu0 %vm410_vm1, %v9893_v43  ;;  %8536 = vmatpush3.bf16.msra.mxu0 %v5058_v38  ;;  %v9958_v38 = vpack.c.bf16 %v4146_v34, %v4145_v33  ;;  %v4162_v33 = vld [vmem:[#allocation2 + $0x15c] sm:$0xff]  ;;  %v1476_v34 = vpack.c.bf16 %v1416_v28, %v1415_v27  ;;  %v4173_v27 = vld [vmem:[#allocation2 + $0x1b4] sm:$0xff] }
  0x67   : > { %9575 = vmatprep.subr.msk.bf16.mxu0 %vm988_vm0, %v9917_v52  ;;  %v10007_v39 = vpack.c.bf16 %v4162_v33, %v4161_v32  ;;  %v4174_v28 = vld [vmem:[#allocation2 + $0x1bc] sm:$0xff]  ;;  %v1431_v32 = vld [vmem:[#allocation2 + $0xb1] sm:$0xff] }
  0x68   : > { %v1432_v33 = vld [vmem:[#allocation2 + $0xb9] sm:$0xff] }
  0x69   : > { %v1484_v49 = vpack.c.bf16 %v1432_v33, %v1431_v32  ;;  %v1443_v33 = vld [vmem:[#allocation2 + $0x111] sm:$0xff] }
  0x6b   : > { %8178 = vmatmul.mubr.msk.bf16.gmra.mrb[36].mxu1 %vm410_vm1, %v814_v44  ;;  %v4147_v44 = vld [vmem:[#allocation2 + $0xe4] sm:$0xff] }
  0x6c   : > { %8181 = vmatprep.mubr.msk.bf16.mxu1 %vm410_vm1, %v815_v46  ;;  %v4148_v46 = vld [vmem:[#allocation2 + $0xec] sm:$0xff] }
  0x6d   : > { %8476 = vmatmul.mubr.msk.bf16.gmra.mrb[4].mxu0 %vm410_vm1, %v9895_v45  ;;  %v9966_v53 = vpack.c.bf16 %v4148_v46, %v4147_v44  ;;  %v1420_v44 = vld [vmem:[#allocation2 + $0x59] sm:$0xff]  ;;  %v4163_v46 = vld [vmem:[#allocation2 + $0x164] sm:$0xff] }
  0x6e   : > { %8479 = vmatprep.mubr.msk.bf16.mxu0 %vm410_vm1, %v9897_v47  ;;  %v10015_v56 = vpack.c.bf16 %v4164_v48, %v4163_v46  ;;  %v4177_v46 = vld [vmem:[#allocation2 + $0x1d4] sm:$0xff]  ;;  %v4178_v48 = vld [vmem:[#allocation2 + $0x1dc] sm:$0xff] }
  0x73   : > { %8182 = vmatmul.mubr.msk.bf16.gmra.mrb[40].mxu1 %vm410_vm1, %v816_v61  ;;  %v1409_v61 = vld [vmem:[#allocation2 + $0x1] sm:$0xff] }
  0x74   : > { %8185 = vmatprep.mubr.msk.bf16.mxu1 %vm410_vm1, %v817_v62  ;;  %v1410_v62 = vld [vmem:[#allocation2 + $0x9] sm:$0xff] }
  0x75   : > { %8480 = vmatmul.mubr.msk.bf16.gmra.mrb[8].mxu0 %vm410_vm1, %v9924_v10  ;;  %v1473_v5 = vpack.c.bf16 %v1410_v62, %v1409_v61  ;;  %v1424_v61 = vld [vmem:[#allocation2 + $0x79] sm:$0xff]  ;;  %v4167_v62 = vld [vmem:[#allocation2 + $0x184] sm:$0xff] }
  0x76   : > { %8483 = vmatprep.mubr.msk.bf16.mxu0 %vm410_vm1, %v9928_v63  ;;  %v1480_v8 = vpack.c.bf16 %v1424_v61, %v1423_v60  ;;  %v4179_v60 = vld [vmem:[#allocation2 + $0x1e4] sm:$0xff]  ;;  %v4180_v61 = vld [vmem:[#allocation2 + $0x1ec] sm:$0xff] }
  0x7b   : > { %8186 = vmatmul.mubr.msk.bf16.gmra.mrb[44].mxu1 %vm410_vm1, %v818_v11  ;;  %v4155_v11 = vld [vmem:[#allocation2 + $0x124] sm:$0xff] }
  0x7c   : > { %8189 = vmatprep.mubr.msk.bf16.mxu1 %vm410_vm1, %v819_v13  ;;  %v4156_v13 = vld [vmem:[#allocation2 + $0x12c] sm:$0xff] }
  0x7d   : > { %8484 = vmatmul.mubr.msk.bf16.gmra.mrb[12].mxu0 %vm410_vm1, %v9936_v12  ;;  %v9986_v20 = vpack.c.bf16 %v4156_v13, %v4155_v11  ;;  %v10025_v11 = vpack.c.bf16 %v4168_v0, %v4167_v62  ;;  %v1437_v62 = vld [vmem:[#allocation2 + $0xe1] sm:$0xff]  ;;  %v1438_v0 = vld [vmem:[#allocation2 + $0xe9] sm:$0xff] }
  0x7e   : > { %8487 = vmatprep.mubr.msk.bf16.mxu0 %vm410_vm1, %v9938_v14 }
  0x83   : > { %8190 = vmatmul.mubr.msk.bf16.gmra.mrb[48].mxu1 %vm410_vm1, %v820_v23  ;;  %v9990_v23 = vpack.c.bf16 %v4158_v18, %v4157_v17  ;;  %v1428_v17 = vld [vmem:[#allocation2 + $0x99] sm:$0xff]  ;;  %v4171_v18 = vld [vmem:[#allocation2 + $0x1a4] sm:$0xff] }
  0x84   : > { %8193 = vmatprep.mubr.msk.bf16.mxu1 %vm410_vm1, %v821_v25  ;;  %v9996_v25 = vld [vmem:[%s10662_s2 + $0x6] sm:$0x3] }
  0x85   : > { %8488 = vmatmul.mubr.msk.bf16.gmra.mrb[16].mxu0 %vm410_vm1, %v9946_v24 }
  0x86   : > { %8491 = vmatprep.mubr.msk.bf16.mxu0 %vm410_vm1, %v9948_v26 }
  0x8b   : > { %8194 = vmatmul.mubr.msk.bf16.gmra.mrb[52].mxu1 %vm410_vm1, %v822_v35  ;;  %v10005_v35 = vpack.c.bf16 %v4160_v59, %v4159_v29  ;;  %v1482_v29 = vpack.c.bf16 %v1428_v17, %v1427_v16  ;;  %v7659_v16 = vunpack.c.h.bf16 %v9909_v50  ;;  %v4183_v50 = vld [vmem:[#allocation2 + $0x204] sm:$0xff] }
  0x8c   : > { %8197 = vmatprep.mubr.msk.bf16.mxu1 %vm410_vm1, %v823_v37  ;;  %v1477_v37 = vpack.c.bf16 %v1418_v31, %v1417_v30  ;;  %v10037_v31 = vpack.c.bf16 %v4174_v28, %v4173_v27  ;;  %v4184_v27 = vld [vmem:[#allocation2 + $0x20c] sm:$0xff] }
  0x8d   : > { %8492 = vmatmul.mubr.msk.bf16.gmra.mrb[20].mxu0 %vm410_vm1, %v9956_v36  ;;  %606 = vst.msk [vmem:[#allocation2 + $0x218] sm:$0xff] %vm410_vm1, %v7659_v16  ;;  %v1442_v28 = vld [vmem:[#allocation2 + $0x109] sm:$0xff]  ;;  %v1459_v16 = vld [vmem:[#allocation2 + $0x191] sm:$0xff] }
  0x8e   : > { %8495 = vmatprep.mubr.msk.bf16.mxu0 %vm410_vm1, %v9958_v38 }
  0x93   : > { %8198 = vmatmul.mubr.msk.bf16.gmra.mrb[56].mxu1 %vm410_vm1, %v824_v9  ;;  %v4166_v9 = vld [vmem:[#allocation2 + $0x17c] sm:$0xff] }
  0x94   : > { %8201 = vmatprep.mubr.msk.bf16.mxu1 %vm410_vm1, %v825_v54  ;;  %v1478_v54 = vpack.c.bf16 %v1420_v44, %v1419_v42  ;;  %v10017_v58 = vpack.c.bf16 %v4166_v9, %v4165_v51  ;;  %v1433_v42 = vld [vmem:[#allocation2 + $0xc1] sm:$0xff]  ;;  %v1434_v44 = vld [vmem:[#allocation2 + $0xc9] sm:$0xff]  ;;  %v10047_v9 = vpack.c.bf16 %v4178_v48, %v4177_v46  ;;  %v5736_v48 = vsel %vm988_vm0, %v9917_v52, 0  ;;  %v1452_v52 = vld [vmem:[#allocation2 + $0x159] sm:$0xff] }
  0x95   : > { %8496 = vmatmul.mubr.msk.bf16.gmra.mrb[24].mxu0 %vm410_vm1, %v9966_v53  ;;  %v1485_v51 = vpack.c.bf16 %v1434_v44, %v1433_v42  ;;  %v1446_v42 = vld [vmem:[#allocation2 + $0x129] sm:$0xff] }
  0x96   : > { %8499 = vmatprep.mubr.msk.bf16.mxu0 %vm410_vm1, %v9968_v55 }
  0x9b   : > { %8202 = vmatmul.mubr.msk.bf16.gmra.mrb[60].mxu1 %vm410_vm1, %v826_v2  ;;  %v1426_v2 = vld [vmem:[#allocation2 + $0x89] sm:$0xff] }
  0x9c   : > { %8207 = vmatprep.mubr.msk.bf16.mxu1 %vm410_vm1, %v1473_v5  ;;  %v4169_v5 = vld [vmem:[#allocation2 + $0x194] sm:$0xff]  ;;  %v1481_v13 = vpack.c.bf16 %v1426_v2, %v1425_v1  ;;  %v4182_v2 = vld [vmem:[#allocation2 + $0x1fc] sm:$0xff] }
  0x9d   : > { %8500 = vmatmul.mubr.msk.bf16.gmra.mrb[28].mxu0 %vm410_vm1, %v9976_v4  ;;  %v10027_v15 = vpack.c.bf16 %v4170_v7, %v4169_v5  ;;  %v4181_v1 = vld [vmem:[#allocation2 + $0x1f4] sm:$0xff] }
  0x9e   : > { %8503 = vmatprep.mubr.msk.bf16.mxu0 %vm410_vm1, %v9978_v6  ;;  %v7812_v7 = vld [vmem:[%s9884_s15 + $0x10] sm:$0xff]  }
  0x9f   : > { %v7662_v17 = vunpack.c.l.bf16 %v7812_v7 }
  0xa1   : > { %607 = vst.msk [vmem:[#allocation2 + $0x220] sm:$0xff] %vm410_vm1, %v7662_v17  ;;  %v1461_v17 = vld [vmem:[#allocation2 + $0x1a1] sm:$0xff] }
  0xa3   : > { %8208 = vmatmul.mubr.msk.bf16.vlgmr.msra.gmra.mrb[0].mxu1 %vm410_vm1, %v1474_v19  ;;  %v4172_v19 = vld [vmem:[#allocation2 + $0x1ac] sm:$0xff] }
  0xa4   : > { %8272 = vmatpush3.bf16.msra.mxu1 %v2346_v21  ;;  %8211 = vmatprep.mubr.msk.bf16.mxu1 %vm410_vm1, %v1475_v22  ;;  %v1429_v21 = vld [vmem:[#allocation2 + $0xa1] sm:$0xff]  ;;  %v1430_v22 = vld [vmem:[#allocation2 + $0xa9] sm:$0xff]  ;;  %v10035_v59 = vpack.c.bf16 %v4172_v19, %v4171_v18  ;;  %v10059_v18 = vpack.c.bf16 %v4182_v2, %v4181_v1  ;;  %v1439_v19 = vld [vmem:[#allocation2 + $0xf1] sm:$0xff] }
  0xa5   : > { %8504 = vmatmul.mubr.msk.bf16.gmra.mrb[32].mxu0 %vm410_vm1, %v9986_v20  ;;  %9570 = vmatprep.subr.msk.bf16.mxu1 %vm988_vm0, %v9996_v25  ;;  %v1483_v30 = vpack.c.bf16 %v1430_v22, %v1429_v21  ;;  %v1440_v21 = vld [vmem:[#allocation2 + $0xf9] sm:$0xff]  ;;  %v1441_v22 = vld [vmem:[#allocation2 + $0x101] sm:$0xff] }
  0xa6   : > { %8507 = vmatprep.mubr.msk.bf16.mxu0 %vm410_vm1, %v9990_v23  ;;  %v1489_v32 = vpack.c.bf16 %v1442_v28, %v1441_v22  ;;  %v1456_v2 = vld [vmem:[#allocation2 + $0x179] sm:$0xff]  ;;  %v1463_v22 = vld [vmem:[#allocation2 + $0x1b1] sm:$0xff] }
  0xab   : > { %8212 = vmatmul.mubr.msk.bf16.gmra.mrb[4].mxu1 %vm410_vm1, %v1476_v34  ;;  %v4175_v34 = vld [vmem:[#allocation2 + $0x1c4] sm:$0xff] }
  0xac   : > { %8215 = vmatprep.mubr.msk.bf16.mxu1 %vm410_vm1, %v1477_v37  ;;  %v4176_v37 = vld [vmem:[#allocation2 + $0x1cc] sm:$0xff] }
  0xad   : > { %8508 = vmatmul.mubr.msk.bf16.gmra.mrb[36].mxu0 %vm410_vm1, %v10005_v35  ;;  %v10045_v41 = vpack.c.bf16 %v4176_v37, %v4175_v34  ;;  %v1444_v34 = vld [vmem:[#allocation2 + $0x119] sm:$0xff]  ;;  %v1445_v37 = vld [vmem:[#allocation2 + $0x121] sm:$0xff] }
  0xae   : > { %8511 = vmatprep.mubr.msk.bf16.mxu0 %vm410_vm1, %v10007_v39  ;;  %v1490_v44 = vpack.c.bf16 %v1444_v34, %v1443_v33  ;;  %v1491_v46 = vpack.c.bf16 %v1446_v42, %v1445_v37  ;;  %v1470_v33 = vld [vmem:[#allocation2 + $0x1e9] sm:$0xff]  ;;  %v1471_v37 = vld [vmem:[#allocation2 + $0x1f1] sm:$0xff] }
  0xaf   : > { %v2087_v42 = vld [vmem:[#allocation2 + $0x2] sm:$0xff] }
  0xb3   : > { %8216 = vmatmul.mubr.msk.bf16.gmra.mrb[8].mxu1 %vm410_vm1, %v1478_v54  ;;  %v1435_v54 = vld [vmem:[#allocation2 + $0xd1] sm:$0xff] }
  0xb4   : > { %8219 = vmatprep.mubr.msk.bf16.mxu1 %vm410_vm1, %v1479_v57  ;;  %v1436_v57 = vld [vmem:[#allocation2 + $0xd9] sm:$0xff] }
  0xb5   : > { %8512 = vmatmul.mubr.msk.bf16.gmra.mrb[40].mxu0 %vm410_vm1, %v10015_v56  ;;  %v1486_v5 = vpack.c.bf16 %v1436_v57, %v1435_v54  ;;  %v1450_v54 = vld [vmem:[#allocation2 + $0x149] sm:$0xff] }
  0xb6   : > { %8515 = vmatprep.mubr.msk.bf16.mxu0 %vm410_vm1, %v10017_v58 }
  0xbb   : > { %8220 = vmatmul.mubr.msk.bf16.gmra.mrb[12].mxu1 %vm410_vm1, %v1480_v8  ;;  %v10056_v8 = vpack.c.bf16 %v4180_v61, %v4179_v60  ;;  %v10092_v61 = vld [vmem:[%s10662_s2 + $0x10] sm:$0x3] }
  0xbc   : > { %8223 = vmatprep.mubr.msk.bf16.mxu1 %vm410_vm1, %v1481_v13  ;;  %v1487_v13 = vpack.c.bf16 %v1438_v0, %v1437_v62  ;;  %v1454_v62 = vld [vmem:[#allocation2 + $0x169] sm:$0xff] }
  0xbd   : > { %8516 = vmatmul.mubr.msk.bf16.gmra.mrb[44].mxu0 %vm410_vm1, %v10025_v11 }
  0xbe   : > { %8519 = vmatprep.mubr.msk.bf16.mxu0 %vm410_vm1, %v10027_v15 }
  0xc3   : > { %8224 = vmatmul.mubr.msk.bf16.gmra.mrb[16].mxu1 %vm410_vm1, %v1482_v29  ;;  %v1488_v29 = vpack.c.bf16 %v1440_v21, %v1439_v19  ;;  %v1462_v19 = vld [vmem:[#allocation2 + $0x1a9] sm:$0xff] }
  0xc4   : > { %8227 = vmatprep.mubr.msk.bf16.mxu1 %vm410_vm1, %v1483_v30  ;;  %v10069_v30 = vpack.c.bf16 %v4184_v27, %v4183_v50  ;;  %v1465_v50 = vld [vmem:[#allocation2 + $0x1c1] sm:$0xff]  ;;  %v1466_v27 = vld [vmem:[#allocation2 + $0x1c9] sm:$0xff] }
  0xc5   : > { %8520 = vmatmul.mubr.msk.bf16.gmra.mrb[48].mxu0 %vm410_vm1, %v10035_v59 }
  0xc6   : > { %8523 = vmatprep.mubr.msk.bf16.mxu0 %vm410_vm1, %v10037_v31 }
  0xcb   : > { %8228 = vmatmul.mubr.msk.bf16.gmra.mrb[20].mxu1 %vm410_vm1, %v1484_v49  ;;  %v1447_v49 = vld [vmem:[#allocation2 + $0x131] sm:$0xff] }
  0xcc   : > { %8231 = vmatprep.mubr.msk.bf16.mxu1 %vm410_vm1, %v1485_v51  ;;  %v1448_v51 = vld [vmem:[#allocation2 + $0x139] sm:$0xff] }
  0xcd   : > { %8524 = vmatmul.mubr.msk.bf16.gmra.mrb[52].mxu0 %vm410_vm1, %v10045_v41  ;;  %v1492_v57 = vpack.c.bf16 %v1448_v51, %v1447_v49  ;;  %v2091_v49 = vld [vmem:[#allocation2 + $0x22] sm:$0xff]  ;;  %v2092_v51 = vld [vmem:[#allocation2 + $0x2a] sm:$0xff] }
  0xce   : > { %8527 = vmatprep.mubr.msk.bf16.mxu0 %vm410_vm1, %v10047_v9 }
  0xd3   : > { %8232 = vmatmul.mubr.msk.bf16.gmra.mrb[24].mxu1 %vm410_vm1, %v1486_v5  ;;  %v1458_v5 = vld [vmem:[#allocation2 + $0x189] sm:$0xff] }
  0xd4   : > { %8235 = vmatprep.mubr.msk.bf16.mxu1 %vm410_vm1, %v1487_v13 }
  0xd5   : > { %8528 = vmatmul.mubr.msk.bf16.gmra.mrb[56].mxu0 %vm410_vm1, %v10056_v8 }
  0xd6   : > { %8531 = vmatprep.mubr.msk.bf16.mxu0 %vm410_vm1, %v10059_v18 }
  0xdb   : > { %8236 = vmatmul.mubr.msk.bf16.gmra.mrb[28].mxu1 %vm410_vm1, %v1488_v29  ;;  %v1467_v29 = vld [vmem:[#allocation2 + $0x1d1] sm:$0xff] }
  0xdc   : > { %8239 = vmatprep.mubr.msk.bf16.mxu1 %vm410_vm1, %v1489_v32  ;;  %v1469_v32 = vld [vmem:[#allocation2 + $0x1e1] sm:$0xff] }
  0xdd   : > { %8532 = vmatmul.mubr.msk.bf16.gmra.mrb[60].mxu0 %vm410_vm1, %v10069_v30 }
  0xde   : > { %8537 = vmatprep.mubr.msk.bf16.mxu0 %vm410_vm1, %v9891_v40  ;;  %v1449_v40 = vld [vmem:[#allocation2 + $0x141] sm:$0xff] }
  0xdf   : > { %v1493_v60 = vpack.c.bf16 %v1450_v54, %v1449_v40  ;;  %v10138_v54 = vpack.c.bf16 %v2092_v51, %v2091_v49 }
  0xe3   : > { %8240 = vmatmul.mubr.msk.bf16.gmra.mrb[32].mxu1 %vm410_vm1, %v1490_v44  ;;  %v2088_v44 = vld [vmem:[#allocation2 + $0xa] sm:$0xff] }
  0xe4   : > { %8243 = vmatprep.mubr.msk.bf16.mxu1 %vm410_vm1, %v1491_v46 }
  0xe5   : > { %8538 = vmatmul.mubr.msk.bf16.vlgmr.msra.gmra.mrb[0].mxu0 %vm410_vm1, %v9893_v43  ;;  %v1451_v43 = vld [vmem:[#allocation2 + $0x151] sm:$0xff] }
  0xe6   : > { %8541 = vmatprep.mubr.msk.bf16.mxu0 %vm410_vm1, %v9895_v45  ;;  %8602 = vmatpush3.bf16.msra.mxu0 %v5736_v48  ;;  %v1453_v45 = vld [vmem:[#allocation2 + $0x161] sm:$0xff]  ;;  %v1494_v0 = vpack.c.bf16 %v1452_v52, %v1451_v43  ;;  %v2089_v48 = vld [vmem:[#allocation2 + $0x12] sm:$0xff] }
  0xe7   : > { %9576 = vmatprep.subr.msk.bf16.mxu0 %vm988_vm0, %v10092_v61  ;;  %v1495_v1 = vpack.c.bf16 %v1454_v62, %v1453_v45  ;;  %v2099_v45 = vld [vmem:[#allocation2 + $0x62] sm:$0xff]  ;;  %v2100_v62 = vld [vmem:[#allocation2 + $0x6a] sm:$0xff] }
  0xeb   : > { %8244 = vmatmul.mubr.msk.bf16.gmra.mrb[36].mxu1 %vm410_vm1, %v1492_v57  ;;  %v2094_v57 = vld [vmem:[#allocation2 + $0x3a] sm:$0xff] }
  0xec   : > { %8247 = vmatprep.mubr.msk.bf16.mxu1 %vm410_vm1, %v1493_v60  ;;  %v2096_v60 = vld [vmem:[#allocation2 + $0x4a] sm:$0xff] }
  0xed   : > { %8542 = vmatmul.mubr.msk.bf16.gmra.mrb[4].mxu0 %vm410_vm1, %v9897_v47  ;;  %v1455_v47 = vld [vmem:[#allocation2 + $0x171] sm:$0xff] }
  0xee   : > { %8545 = vmatprep.mubr.msk.bf16.mxu0 %vm410_vm1, %v9924_v10  ;;  %v1457_v10 = vld [vmem:[#allocation2 + $0x181] sm:$0xff]  ;;  %v1496_v7 = vpack.c.bf16 %v1456_v2, %v1455_v47  ;;  %v2104_v2 = vld [vmem:[#allocation2 + $0x8a] sm:$0xff] }
  0xef   : > { %v1497_v13 = vpack.c.bf16 %v1458_v5, %v1457_v10  ;;  %v2102_v47 = vld [vmem:[#allocation2 + $0x7a] sm:$0xff] }
  0xf3   : > { %8248 = vmatmul.mubr.msk.bf16.gmra.mrb[40].mxu1 %vm410_vm1, %v1494_v0 }
  0xf4   : > { %8251 = vmatprep.mubr.msk.bf16.mxu1 %vm410_vm1, %v1495_v1  ;;  %v10166_v1 = vpack.c.bf16 %v2100_v62, %v2099_v45  ;;  %v2128_v45 = vld [vmem:[#allocation2 + $0x14a] sm:$0xff] }
  0xf5   : > { %8546 = vmatmul.mubr.msk.bf16.gmra.mrb[8].mxu0 %vm410_vm1, %v9928_v63  ;;  %v1460_v63 = vld [vmem:[#allocation2 + $0x199] sm:$0xff]  ;;  %v5485_v62 = vld [vmem:[#allocation2 + $0x65] sm:$0xff] }
  0xf6   : > { %8549 = vmatprep.mubr.msk.bf16.mxu0 %vm410_vm1, %v9936_v12  ;;  %v1498_v21 = vpack.c.bf16 %v1460_v63, %v1459_v16  ;;  %v1499_v12 = vpack.c.bf16 %v1462_v19, %v1461_v17  ;;  %v2110_v17 = vld [vmem:[#allocation2 + $0xba] sm:$0xff]  ;;  %v2112_v19 = vld [vmem:[#allocation2 + $0xca] sm:$0xff] }
  0xfb   : > { %8252 = vmatmul.mubr.msk.bf16.gmra.mrb[44].mxu1 %vm410_vm1, %v1496_v7  ;;  %v2106_v7 = vld [vmem:[#allocation2 + $0x9a] sm:$0xff] }
  0xfc   : > { %8255 = vmatprep.mubr.msk.bf16.mxu1 %vm410_vm1, %v1497_v13  ;;  %v2108_v13 = vld [vmem:[#allocation2 + $0xaa] sm:$0xff] }
  0xfd   : > { %8550 = vmatmul.mubr.msk.bf16.gmra.mrb[12].mxu0 %vm410_vm1, %v9938_v14  ;;  %v1464_v14 = vld [vmem:[#allocation2 + $0x1b9] sm:$0xff] }
  0xfe   : > { %8553 = vmatprep.mubr.msk.bf16.mxu0 %vm410_vm1, %v9946_v24  ;;  %v1500_v28 = vpack.c.bf16 %v1464_v14, %v1463_v22  ;;  %v1501_v24 = vpack.c.bf16 %v1466_v27, %v1465_v50  ;;  %v2114_v22 = vld [vmem:[#allocation2 + $0xda] sm:$0xff]  ;;  %v2116_v14 = vld [vmem:[#allocation2 + $0xea] sm:$0xff] }
 0x103   : > { %8256 = vmatmul.mubr.msk.bf16.gmra.mrb[48].mxu1 %vm410_vm1, %v1498_v21 }
 0x104   : > { %8259 = vmatprep.mubr.msk.bf16.mxu1 %vm410_vm1, %v1499_v12 }
 0x105   : > { %8554 = vmatmul.mubr.msk.bf16.gmra.mrb[16].mxu0 %vm410_vm1, %v9948_v26  ;;  %v1468_v26 = vld [vmem:[#allocation2 + $0x1d9] sm:$0xff] }
 0x106   : > { %8557 = vmatprep.mubr.msk.bf16.mxu0 %vm410_vm1, %v9956_v36  ;;  %v1502_v34 = vpack.c.bf16 %v1468_v26, %v1467_v29  ;;  %v1503_v36 = vpack.c.bf16 %v1470_v33, %v1469_v32  ;;  %v2119_v29 = vld [vmem:[#allocation2 + $0x102] sm:$0xff]  ;;  %v2120_v26 = vld [vmem:[#allocation2 + $0x10a] sm:$0xff] }
 0x107   : > { %v5477_v32 = vld [vmem:[#allocation2 + $0x25] sm:$0xff]  ;;  %v5478_v33 = vld [vmem:[#allocation2 + $0x2d] sm:$0xff] }
 0x10b   : > { %8260 = vmatmul.mubr.msk.bf16.gmra.mrb[52].mxu1 %vm410_vm1, %v1500_v28  ;;  %v2118_v28 = vld [vmem:[#allocation2 + $0xfa] sm:$0xff] }
 0x10c   : > { %8263 = vmatprep.mubr.msk.bf16.mxu1 %vm410_vm1, %v1501_v24  ;;  %v4861_v24 = vld [vmem:[#allocation2 + $0x214] sm:$0xff] }
 0x10d   : > { %8558 = vmatmul.mubr.msk.bf16.gmra.mrb[20].mxu0 %vm410_vm1, %v9958_v38  ;;  %v1472_v38 = vld [vmem:[#allocation2 + $0x1f9] sm:$0xff] }
 0x10e   : > { %8561 = vmatprep.mubr.msk.bf16.mxu0 %vm410_vm1, %v9966_v53  ;;  %v1504_v46 = vpack.c.bf16 %v1472_v38, %v1471_v37  ;;  %v2151_v53 = vpack.c.bf16 %v2088_v44, %v2087_v42  ;;  %v10226_v37 = vpack.c.bf16 %v2120_v26, %v2119_v29  ;;  %v2122_v38 = vld [vmem:[#allocation2 + $0x11a] sm:$0xff]  ;;  %v2135_v29 = vld [vmem:[#allocation2 + $0x182] sm:$0xff]  ;;  %v2136_v26 = vld [vmem:[#allocation2 + $0x18a] sm:$0xff] }
 0x10f   : > { %v5479_v42 = vld [vmem:[#allocation2 + $0x35] sm:$0xff]  ;;  %v5480_v44 = vld [vmem:[#allocation2 + $0x3d] sm:$0xff] }
 0x110   : > { %v5542_v51 = vpack.c.bf16 %v5480_v44, %v5479_v42  ;;  %v2137_v42 = vld [vmem:[#allocation2 + $0x192] sm:$0xff]  ;;  %v2138_v44 = vld [vmem:[#allocation2 + $0x19a] sm:$0xff] }
 0x113   : > { %8264 = vmatmul.mubr.msk.bf16.gmra.mrb[56].mxu1 %vm410_vm1, %v1502_v34 }
 0x114   : > { %8267 = vmatprep.mubr.msk.bf16.mxu1 %vm410_vm1, %v1503_v36 }
 0x115   : > { %8562 = vmatmul.mubr.msk.bf16.gmra.mrb[24].mxu0 %vm410_vm1, %v9968_v55  ;;  %v2090_v55 = vld [vmem:[#allocation2 + $0x1a] sm:$0xff] }
 0x116   : > { %8565 = vmatprep.mubr.msk.bf16.mxu0 %vm410_vm1, %v9976_v4  ;;  %v10134_v40 = vpack.c.bf16 %v2090_v55, %v2089_v48  ;;  %v3024_v4 = vsel %vm988_vm0, %v9996_v25, 0  ;;  %v9602_v25 = vld [vmem:[%s10662_s2 + $0x8] sm:$0x3]  ;;  %v5482_v55 = vld [vmem:[#allocation2 + $0x4d] sm:$0xff] }
 0x117   : > { %v5481_v48 = vld [vmem:[#allocation2 + $0x45] sm:$0xff] }
 0x11b   : > { %8268 = vmatmul.mubr.msk.bf16.gmra.mrb[60].mxu1 %vm410_vm1, %v1504_v46  ;;  %v2123_v46 = vld [vmem:[#allocation2 + $0x122] sm:$0xff] }
 0x11c   : > { %8273 = vmatprep.mubr.msk.bf16.mxu1 %vm410_vm1, %v2151_v53  ;;  %v2124_v53 = vld [vmem:[#allocation2 + $0x12a] sm:$0xff] }
 0x11d   : > { %8566 = vmatmul.mubr.msk.bf16.gmra.mrb[28].mxu0 %vm410_vm1, %v9978_v6  ;;  %v2093_v6 = vld [vmem:[#allocation2 + $0x32] sm:$0xff] }
 0x11e   : > { %8569 = vmatprep.mubr.msk.bf16.mxu0 %vm410_vm1, %v9986_v20  ;;  %v2095_v20 = vld [vmem:[#allocation2 + $0x42] sm:$0xff]  ;;  %v10152_v43 = vpack.c.bf16 %v2094_v57, %v2093_v6  ;;  %v5543_v6 = vpack.c.bf16 %v5482_v55, %v5481_v48  ;;  %v6414_v57 = vsel %vm988_vm0, %v10092_v61, 0  ;;  %v2140_v55 = vld [vmem:[#allocation2 + $0x1aa] sm:$0xff] }
 0x11f   : > { %v10154_v52 = vpack.c.bf16 %v2096_v60, %v2095_v20  ;;  %v2125_v20 = vld [vmem:[#allocation2 + $0x132] sm:$0xff]  ;;  %v2126_v60 = vld [vmem:[#allocation2 + $0x13a] sm:$0xff]  ;;  %v2139_v48 = vld [vmem:[#allocation2 + $0x1a2] sm:$0xff] }
 0x120   : > { %v10246_v61 = vpack.c.bf16 %v2126_v60, %v2125_v20  ;;  %v10278_v60 = vpack.c.bf16 %v2140_v55, %v2139_v48 }
 0x123   : > { %8274 = vmatmul.mubr.msk.bf16.vlgmr.msra.gmra.mrb[0].mxu1 %vm410_vm1, %v10134_v40 }
 0x124   : > { %8338 = vmatpush3.bf16.msra.mxu1 %v3024_v4  ;;  %8277 = vmatprep.mubr.msk.bf16.mxu1 %vm410_vm1, %v10138_v54  ;;  %v10236_v4 = vpack.c.bf16 %v2124_v53, %v2123_v46  ;;  %v5495_v46 = vld [vmem:[#allocation2 + $0xb5] sm:$0xff]  ;;  %v5496_v53 = vld [vmem:[#allocation2 + $0xbd] sm:$0xff] }
 0x125   : > { %8570 = vmatmul.mubr.msk.bf16.gmra.mrb[32].mxu0 %vm410_vm1, %v9990_v23  ;;  %9572 = vmatprep.subr.msk.bf16.mxu1 %vm988_vm0, %v9602_v25  ;;  %v2097_v23 = vld [vmem:[#allocation2 + $0x52] sm:$0xff]  ;;  %v5550_v20 = vpack.c.bf16 %v5496_v53, %v5495_v46 }
 0x126   : > { %8573 = vmatprep.mubr.msk.bf16.mxu0 %vm410_vm1, %v10005_v35  ;;  %v2098_v35 = vld [vmem:[#allocation2 + $0x5a] sm:$0xff]  ;;  %v5510_v46 = vld [vmem:[#allocation2 + $0x12d] sm:$0xff] }
 0x127   : > { %v10164_v0 = vpack.c.bf16 %v2098_v35, %v2097_v23  ;;  %v5483_v25 = vld [vmem:[#allocation2 + $0x55] sm:$0xff]  ;;  %v5484_v23 = vld [vmem:[#allocation2 + $0x5d] sm:$0xff] }
 0x128   : > { %v2127_v35 = vld [vmem:[#allocation2 + $0x142] sm:$0xff] }
 0x12b   : > { %8278 = vmatmul.mubr.msk.bf16.gmra.mrb[4].mxu1 %vm410_vm1, %v10152_v43 }
 0x12c   : > { %8281 = vmatprep.mubr.msk.bf16.mxu1 %vm410_vm1, %v10154_v52 }
 0x12d   : > { %8574 = vmatmul.mubr.msk.bf16.gmra.mrb[36].mxu0 %vm410_vm1, %v10007_v39  ;;  %v2101_v39 = vld [vmem:[#allocation2 + $0x72] sm:$0xff] }
 0x12e   : > { %8577 = vmatprep.mubr.msk.bf16.mxu0 %vm410_vm1, %v10015_v56  ;;  %v2103_v56 = vld [vmem:[#allocation2 + $0x82] sm:$0xff]  ;;  %v10176_v10 = vpack.c.bf16 %v2102_v47, %v2101_v39  ;;  %v5486_v39 = vld [vmem:[#allocation2 + $0x6d] sm:$0xff]  ;;  %v5544_v47 = vpack.c.bf16 %v5484_v23, %v5483_v25 }
 0x12f   : > { %v10178_v5 = vpack.c.bf16 %v2104_v2, %v2103_v56  ;;  %v10248_v56 = vpack.c.bf16 %v2128_v45, %v2127_v35  ;;  %v5545_v2 = vpack.c.bf16 %v5486_v39, %v5485_v62  ;;  %v2141_v23 = vld [vmem:[#allocation2 + $0x1b2] sm:$0xff]  ;;  %v2142_v35 = vld [vmem:[#allocation2 + $0x1ba] sm:$0xff]  ;;  %v2143_v39 = vld [vmem:[#allocation2 + $0x1c2] sm:$0xff] }
 0x130   : > { %v5499_v45 = vld [vmem:[#allocation2 + $0xd5] sm:$0xff]  ;;  %v5500_v62 = vld [vmem:[#allocation2 + $0xdd] sm:$0xff] }
 0x133   : > { %8282 = vmatmul.mubr.msk.bf16.gmra.mrb[8].mxu1 %vm410_vm1, %v10164_v0 }
 0x134   : > { %8285 = vmatprep.mubr.msk.bf16.mxu1 %vm410_vm1, %v10166_v1 }
 0x135   : > { %8578 = vmatmul.mubr.msk.bf16.gmra.mrb[40].mxu0 %vm410_vm1, %v10017_v58  ;;  %v2105_v58 = vld [vmem:[#allocation2 + $0x92] sm:$0xff] }
 0x136   : > { %8581 = vmatprep.mubr.msk.bf16.mxu0 %vm410_vm1, %v10025_v11  ;;  %v2107_v11 = vld [vmem:[#allocation2 + $0xa2] sm:$0xff]  ;;  %v10188_v16 = vpack.c.bf16 %v2106_v7, %v2105_v58  ;;  %v2129_v58 = vld [vmem:[#allocation2 + $0x152] sm:$0xff]  ;;  %v2130_v7 = vld [vmem:[#allocation2 + $0x15a] sm:$0xff] }
 0x137   : > { %v10190_v63 = vpack.c.bf16 %v2108_v13, %v2107_v11  ;;  %v5487_v11 = vld [vmem:[#allocation2 + $0x75] sm:$0xff]  ;;  %v5488_v13 = vld [vmem:[#allocation2 + $0x7d] sm:$0xff] }
 0x13b   : > { %8286 = vmatmul.mubr.msk.bf16.gmra.mrb[12].mxu1 %vm410_vm1, %v10176_v10 }
 0x13c   : > { %8289 = vmatprep.mubr.msk.bf16.mxu1 %vm410_vm1, %v10178_v5 }
 0x13d   : > { %8582 = vmatmul.mubr.msk.bf16.gmra.mrb[44].mxu0 %vm410_vm1, %v10027_v15  ;;  %v2109_v15 = vld [vmem:[#allocation2 + $0xb2] sm:$0xff] }
 0x13e   : > { %8585 = vmatprep.mubr.msk.bf16.mxu0 %vm410_vm1, %v10035_v59  ;;  %v2111_v59 = vld [vmem:[#allocation2 + $0xc2] sm:$0xff]  ;;  %v10200_v21 = vpack.c.bf16 %v2110_v17, %v2109_v15  ;;  %v2132_v17 = vld [vmem:[#allocation2 + $0x16a] sm:$0xff] }
 0x13f   : > { %v10202_v12 = vpack.c.bf16 %v2112_v19, %v2111_v59  ;;  %v2131_v15 = vld [vmem:[#allocation2 + $0x162] sm:$0xff]  ;;  %v5490_v19 = vld [vmem:[#allocation2 + $0x8d] sm:$0xff] }
 0x140   : > { %v5489_v59 = vld [vmem:[#allocation2 + $0x85] sm:$0xff] }
 0x143   : > { %8290 = vmatmul.mubr.msk.bf16.gmra.mrb[16].mxu1 %vm410_vm1, %v10188_v16 }
 0x144   : > { %8293 = vmatprep.mubr.msk.bf16.mxu1 %vm410_vm1, %v10190_v63 }
 0x145   : > { %8586 = vmatmul.mubr.msk.bf16.gmra.mrb[48].mxu0 %vm410_vm1, %v10037_v31  ;;  %v2113_v31 = vld [vmem:[#allocation2 + $0xd2] sm:$0xff] }
 0x146   : > { %8589 = vmatprep.mubr.msk.bf16.mxu0 %vm410_vm1, %v10045_v41  ;;  %v2115_v41 = vld [vmem:[#allocation2 + $0xe2] sm:$0xff]  ;;  %v10212_v50 = vpack.c.bf16 %v2114_v22, %v2113_v31  ;;  %v10256_v31 = vpack.c.bf16 %v2130_v7, %v2129_v58  ;;  %v5546_v22 = vpack.c.bf16 %v5488_v13, %v5487_v11  ;;  %v5502_v58 = vld [vmem:[#allocation2 + $0xed] sm:$0xff]  ;;  %v10286_v7 = vpack.c.bf16 %v2142_v35, %v2141_v23 }
 0x147   : > { %v10214_v27 = vpack.c.bf16 %v2116_v14, %v2115_v41  ;;  %v10258_v41 = vpack.c.bf16 %v2132_v17, %v2131_v15  ;;  %v5547_v14 = vpack.c.bf16 %v5490_v19, %v5489_v59  ;;  %v5552_v11 = vpack.c.bf16 %v5500_v62, %v5499_v45  ;;  %v2145_v17 = vld [vmem:[#allocation2 + $0x1d2] sm:$0xff]  ;;  %v2146_v59 = vld [vmem:[#allocation2 + $0x1da] sm:$0xff]  ;;  %v5517_v62 = vld [vmem:[#allocation2 + $0x165] sm:$0xff] }
 0x148   : > { %v5503_v19 = vld [vmem:[#allocation2 + $0xf5] sm:$0xff]  ;;  %v5516_v45 = vld [vmem:[#allocation2 + $0x15d] sm:$0xff] }
 0x14b   : > { %8294 = vmatmul.mubr.msk.bf16.gmra.mrb[20].mxu1 %vm410_vm1, %v10200_v21 }
 0x14c   : > { %8297 = vmatprep.mubr.msk.bf16.mxu1 %vm410_vm1, %v10202_v12 }
 0x14d   : > { %8590 = vmatmul.mubr.msk.bf16.gmra.mrb[52].mxu0 %vm410_vm1, %v10047_v9  ;;  %v2117_v9 = vld [vmem:[#allocation2 + $0xf2] sm:$0xff] }
 0x14e   : > { %8593 = vmatprep.mubr.msk.bf16.mxu0 %vm410_vm1, %v10056_v8  ;;  %v4862_v8 = vld [vmem:[#allocation2 + $0x21c] sm:$0xff]  ;;  %v10224_v34 = vpack.c.bf16 %v2118_v28, %v2117_v9  ;;  %v2133_v9 = vld [vmem:[#allocation2 + $0x172] sm:$0xff] }
 0x14f   : > { %v4894_v36 = vpack.c.bf16 %v4862_v8, %v4861_v24  ;;  %v2134_v28 = vld [vmem:[#allocation2 + $0x17a] sm:$0xff] }
 0x150   : > { %v5491_v24 = vld [vmem:[#allocation2 + $0x95] sm:$0xff]  ;;  %v5492_v8 = vld [vmem:[#allocation2 + $0x9d] sm:$0xff] }
 0x153   : > { %8298 = vmatmul.mubr.msk.bf16.gmra.mrb[24].mxu1 %vm410_vm1, %v10212_v50 }
 0x154   : > { %8301 = vmatprep.mubr.msk.bf16.mxu1 %vm410_vm1, %v10214_v27 }
 0x155   : > { %8594 = vmatmul.mubr.msk.bf16.gmra.mrb[56].mxu0 %vm410_vm1, %v10059_v18  ;;  %v5541_v18 = vpack.c.bf16 %v5478_v33, %v5477_v32  ;;  %v5493_v32 = vld [vmem:[#allocation2 + $0xa5] sm:$0xff]  ;;  %v5494_v33 = vld [vmem:[#allocation2 + $0xad] sm:$0xff] }
 0x156   : > { %8597 = vmatprep.mubr.msk.bf16.mxu0 %vm410_vm1, %v10069_v30  ;;  %v2121_v30 = vld [vmem:[#allocation2 + $0x112] sm:$0xff] }
 0x157   : > { %v10234_v49 = vpack.c.bf16 %v2122_v38, %v2121_v30  ;;  %v10268_v30 = vpack.c.bf16 %v2136_v26, %v2135_v29  ;;  %v5549_v38 = vpack.c.bf16 %v5494_v33, %v5493_v32  ;;  %v2149_v33 = vld [vmem:[#allocation2 + $0x1f2] sm:$0xff] }
 0x15b   : > { %8302 = vmatmul.mubr.msk.bf16.gmra.mrb[28].mxu1 %vm410_vm1, %v10224_v34 }
 0x15c   : > { %8305 = vmatprep.mubr.msk.bf16.mxu1 %vm410_vm1, %v10226_v37 }
 0x15d   : > { %8598 = vmatmul.mubr.msk.bf16.gmra.mrb[60].mxu0 %vm410_vm1, %v4894_v36  ;;  %v10266_v36 = vpack.c.bf16 %v2134_v28, %v2133_v9  ;;  %v2148_v9 = vld [vmem:[#allocation2 + $0x1ea] sm:$0xff] }
 0x15e   : > { %8603 = vmatprep.mubr.msk.bf16.mxu0 %vm410_vm1, %v5541_v18  ;;  %v5548_v18 = vpack.c.bf16 %v5492_v8, %v5491_v24  ;;  %v5505_v28 = vld [vmem:[#allocation2 + $0x105] sm:$0xff]  ;;  %v5506_v24 = vld [vmem:[#allocation2 + $0x10d] sm:$0xff]  ;;  %v10296_v8 = vpack.c.bf16 %v2146_v59, %v2145_v17 }
 0x15f   : > { %v5555_v32 = vpack.c.bf16 %v5506_v24, %v5505_v28  ;;  %v5525_v17 = vld [vmem:[#allocation2 + $0x1a5] sm:$0xff]  ;;  %v5526_v59 = vld [vmem:[#allocation2 + $0x1ad] sm:$0xff] }
 0x163   : > { %8306 = vmatmul.mubr.msk.bf16.gmra.mrb[32].mxu1 %vm410_vm1, %v10234_v49 }
 0x164   : > { %8309 = vmatprep.mubr.msk.bf16.mxu1 %vm410_vm1, %v10236_v4 }
 0x165   : > { %8604 = vmatmul.mubr.msk.bf16.vlgmr.msra.gmra.mrb[0].mxu0 %vm410_vm1, %v5542_v51  ;;  %v5497_v51 = vld [vmem:[#allocation2 + $0xc5] sm:$0xff] }
 0x166   : > { %8607 = vmatprep.mubr.msk.bf16.mxu0 %vm410_vm1, %v5543_v6  ;;  %8668 = vmatpush3.bf16.msra.mxu0 %v6414_v57  ;;  %v5498_v6 = vld [vmem:[#allocation2 + $0xcd] sm:$0xff]  ;;  %v10276_v57 = vpack.c.bf16 %v2138_v44, %v2137_v42  ;;  %v5508_v42 = vld [vmem:[#allocation2 + $0x11d] sm:$0xff]  ;;  %v5509_v44 = vld [vmem:[#allocation2 + $0x125] sm:$0xff] }
 0x167   : > { %v5551_v25 = vpack.c.bf16 %v5498_v6, %v5497_v51  ;;  %v5557_v55 = vpack.c.bf16 %v5510_v46, %v5509_v44  ;;  %v5511_v51 = vld [vmem:[#allocation2 + $0x135] sm:$0xff]  ;;  %v5512_v6 = vld [vmem:[#allocation2 + $0x13d] sm:$0xff] }
 0x168   : > { %v5558_v23 = vpack.c.bf16 %v5512_v6, %v5511_v51 }
 0x16b   : > { %8310 = vmatmul.mubr.msk.bf16.gmra.mrb[36].mxu1 %vm410_vm1, %v10246_v61 }
 0x16c   : > { %8313 = vmatprep.mubr.msk.bf16.mxu1 %vm410_vm1, %v10248_v56 }
 0x16d   : > { %8608 = vmatmul.mubr.msk.bf16.gmra.mrb[4].mxu0 %vm410_vm1, %v5544_v47  ;;  %v2144_v47 = vld [vmem:[#allocation2 + $0x1ca] sm:$0xff] }
 0x16e   : > { %8611 = vmatprep.mubr.msk.bf16.mxu0 %vm410_vm1, %v5545_v2  ;;  %v5501_v2 = vld [vmem:[#allocation2 + $0xe5] sm:$0xff]  ;;  %v10288_v13 = vpack.c.bf16 %v2144_v47, %v2143_v39  ;;  %v5518_v39 = vld [vmem:[#allocation2 + $0x16d] sm:$0xff] }
 0x16f   : > { %v5553_v15 = vpack.c.bf16 %v5502_v58, %v5501_v2  ;;  %v5561_v2 = vpack.c.bf16 %v5518_v39, %v5517_v62  ;;  %v5522_v58 = vld [vmem:[#allocation2 + $0x18d] sm:$0xff] }
 0x173   : > { %8314 = vmatmul.mubr.msk.bf16.gmra.mrb[40].mxu1 %vm410_vm1, %v10256_v31 }
 0x174   : > { %8317 = vmatprep.mubr.msk.bf16.mxu1 %vm410_vm1, %v10258_v41 }
 0x175   : > { %8612 = vmatmul.mubr.msk.bf16.gmra.mrb[8].mxu0 %vm410_vm1, %v5546_v22  ;;  %v5504_v22 = vld [vmem:[#allocation2 + $0xfd] sm:$0xff] }
 0x176   : > { %8615 = vmatprep.mubr.msk.bf16.mxu0 %vm410_vm1, %v5547_v14  ;;  %v2147_v14 = vld [vmem:[#allocation2 + $0x1e2] sm:$0xff]  ;;  %v5554_v29 = vpack.c.bf16 %v5504_v22, %v5503_v19  ;;  %v5565_v22 = vpack.c.bf16 %v5526_v59, %v5525_v17 }
 0x177   : > { %v10298_v26 = vpack.c.bf16 %v2148_v9, %v2147_v14  ;;  %v5529_v14 = vld [vmem:[#allocation2 + $0x1c5] sm:$0xff]  ;;  %v5530_v9 = vld [vmem:[#allocation2 + $0x1cd] sm:$0xff] }
 0x178   : > { %v5567_v24 = vpack.c.bf16 %v5530_v9, %v5529_v14  ;;  %v6183_v14 = vld [vmem:[#allocation2 + $0x106] sm:$0xff]  ;;  %v6184_v9 = vld [vmem:[#allocation2 + $0x10e] sm:$0xff] }
 0x17b   : > { %8318 = vmatmul.mubr.msk.bf16.gmra.mrb[44].mxu1 %vm410_vm1, %v10266_v36 }
 0x17c   : > { %8321 = vmatprep.mubr.msk.bf16.mxu1 %vm410_vm1, %v10268_v30 }
 0x17d   : > { %8616 = vmatmul.mubr.msk.bf16.gmra.mrb[12].mxu0 %vm410_vm1, %v5548_v18  ;;  %v2150_v18 = vld [vmem:[#allocation2 + $0x1fa] sm:$0xff] }
 0x17e   : > { %8619 = vmatprep.mubr.msk.bf16.mxu0 %vm410_vm1, %v5549_v38  ;;  %v5507_v38 = vld [vmem:[#allocation2 + $0x115] sm:$0xff]  ;;  %v10306_v53 = vpack.c.bf16 %v2150_v18, %v2149_v33 }
 0x17f   : > { %v5556_v48 = vpack.c.bf16 %v5508_v42, %v5507_v38  ;;  %v5537_v38 = vld [vmem:[#allocation2 + $0x205] sm:$0xff]  ;;  %v5538_v42 = vld [vmem:[#allocation2 + $0x20d] sm:$0xff] }
 0x180   : > { %v5571_v46 = vpack.c.bf16 %v5538_v42, %v5537_v38 }
 0x183   : > { %8322 = vmatmul.mubr.msk.bf16.gmra.mrb[48].mxu1 %vm410_vm1, %v10276_v57 }
 0x184   : > { %8325 = vmatprep.mubr.msk.bf16.mxu1 %vm410_vm1, %v10278_v60 }
 0x185   : > { %8620 = vmatmul.mubr.msk.bf16.gmra.mrb[16].mxu0 %vm410_vm1, %v5550_v20  ;;  %v5513_v20 = vld [vmem:[#allocation2 + $0x145] sm:$0xff] }
 0x186   : > { %8623 = vmatprep.mubr.msk.bf16.mxu0 %vm410_vm1, %v5551_v25  ;;  %v5514_v25 = vld [vmem:[#allocation2 + $0x14d] sm:$0xff] }
 0x187   : > { %v5559_v35 = vpack.c.bf16 %v5514_v25, %v5513_v20  ;;  %v6159_v20 = vld [vmem:[#allocation2 + $0x46] sm:$0xff]  ;;  %v6160_v25 = vld [vmem:[#allocation2 + $0x4e] sm:$0xff] }
 0x18b   : > { %8326 = vmatmul.mubr.msk.bf16.gmra.mrb[52].mxu1 %vm410_vm1, %v10286_v7 }
 0x18c   : > { %8329 = vmatprep.mubr.msk.bf16.mxu1 %vm410_vm1, %v10288_v13 }
 0x18d   : > { %8624 = vmatmul.mubr.msk.bf16.gmra.mrb[20].mxu0 %vm410_vm1, %v5552_v11 }
 0x18e   : > { %8627 = vmatprep.mubr.msk.bf16.mxu0 %vm410_vm1, %v5553_v15 }
 0x193   : > { %8330 = vmatmul.mubr.msk.bf16.gmra.mrb[56].mxu1 %vm410_vm1, %v10296_v8 }
 0x194   : > { %8333 = vmatprep.mubr.msk.bf16.mxu1 %vm410_vm1, %v10298_v26 }
 0x195   : > { %8628 = vmatmul.mubr.msk.bf16.gmra.mrb[24].mxu0 %vm410_vm1, %v5554_v29  ;;  %v5533_v29 = vld [vmem:[#allocation2 + $0x1e5] sm:$0xff] }
 0x196   : > { %8631 = vmatprep.mubr.msk.bf16.mxu0 %vm410_vm1, %v5555_v32  ;;  %v5534_v32 = vld [vmem:[#allocation2 + $0x1ed] sm:$0xff] }
 0x197   : > { %v5569_v18 = vpack.c.bf16 %v5534_v32, %v5533_v29  ;;  %v3475_v29 = vld [vmem:[#allocation2 + $0x113] sm:$0xff]  ;;  %v3476_v32 = vld [vmem:[#allocation2 + $0x11b] sm:$0xff] }
 0x198   : > { %v3523_v38 = vpack.c.bf16 %v3476_v32, %v3475_v29 }
 0x19b   : > { %8334 = vmatmul.mubr.msk.bf16.gmra.mrb[60].mxu1 %vm410_vm1, %v10306_v53 }
 0x19c   : > { %8339 = vmatprep.mubr.msk.bf16.mxu1 %vm410_vm1, %v10134_v40  ;;  %v5515_v40 = vld [vmem:[#allocation2 + $0x155] sm:$0xff] }
 0x19d   : > { %8632 = vmatmul.mubr.msk.bf16.gmra.mrb[28].mxu0 %vm410_vm1, %v5556_v48  ;;  %v5560_v47 = vpack.c.bf16 %v5516_v45, %v5515_v40  ;;  %v6155_v48 = vld [vmem:[#allocation2 + $0x26] sm:$0xff]  ;;  %v6164_v45 = vld [vmem:[#allocation2 + $0x6e] sm:$0xff] }
 0x19e   : > { %8635 = vmatprep.mubr.msk.bf16.mxu0 %vm410_vm1, %v5557_v55  ;;  %v6156_v55 = vld [vmem:[#allocation2 + $0x2e] sm:$0xff]  ;;  %v6163_v40 = vld [vmem:[#allocation2 + $0x66] sm:$0xff] }
 0x19f   : > { %v6219_v6 = vpack.c.bf16 %v6156_v55, %v6155_v48  ;;  %v6223_v39 = vpack.c.bf16 %v6164_v45, %v6163_v40  ;;  %v6191_v48 = vld [vmem:[#allocation2 + $0x146] sm:$0xff]  ;;  %v6192_v55 = vld [vmem:[#allocation2 + $0x14e] sm:$0xff] }
 0x1a0   : > { %v6195_v40 = vld [vmem:[#allocation2 + $0x166] sm:$0xff]  ;;  %v6196_v45 = vld [vmem:[#allocation2 + $0x16e] sm:$0xff] }
 0x1a3   : > { %8340 = vmatmul.mubr.msk.bf16.vlgmr.msra.gmra.mrb[0].mxu1 %vm410_vm1, %v10138_v54  ;;  %v5520_v54 = vld [vmem:[#allocation2 + $0x17d] sm:$0xff] }
 0x1a4   : > { %8734 = vmatpush3.bf16.msra.mxu1 %v9682_v3  ;;  %8343 = vmatprep.mubr.msk.bf16.mxu1 %vm410_vm1, %v10152_v43  ;;  %v5519_v3 = vld [vmem:[#allocation2 + $0x175] sm:$0xff]  ;;  %v5521_v43 = vld [vmem:[#allocation2 + $0x185] sm:$0xff] }
 0x1a5   : > { %8636 = vmatmul.mubr.msk.bf16.gmra.mrb[32].mxu0 %vm410_vm1, %v5558_v23  ;;  %v5562_v11 = vpack.c.bf16 %v5520_v54, %v5519_v3  ;;  %v5563_v15 = vpack.c.bf16 %v5522_v58, %v5521_v43  ;;  %v6171_v43 = vld [vmem:[#allocation2 + $0xa6] sm:$0xff]  ;;  %v6172_v58 = vld [vmem:[#allocation2 + $0xae] sm:$0xff] }
 0x1a6   : > { %8639 = vmatprep.mubr.msk.bf16.mxu0 %vm410_vm1, %v5559_v35  ;;  %v6221_v35 = vpack.c.bf16 %v6160_v25, %v6159_v20  ;;  %v3481_v20 = vld [vmem:[#allocation2 + $0x143] sm:$0xff]  ;;  %v3482_v25 = vld [vmem:[#allocation2 + $0x14b] sm:$0xff] }
 0x1ab   : > { %8344 = vmatmul.mubr.msk.bf16.gmra.mrb[4].mxu1 %vm410_vm1, %v10154_v52  ;;  %v5523_v52 = vld [vmem:[#allocation2 + $0x195] sm:$0xff] }
 0x1ac   : > { %8347 = vmatprep.mubr.msk.bf16.mxu1 %vm410_vm1, %v10164_v0  ;;  %v5524_v0 = vld [vmem:[#allocation2 + $0x19d] sm:$0xff] }
 0x1ad   : > { %8640 = vmatmul.mubr.msk.bf16.gmra.mrb[36].mxu0 %vm410_vm1, %v5560_v47  ;;  %v5564_v19 = vpack.c.bf16 %v5524_v0, %v5523_v52  ;;  %v6167_v47 = vld [vmem:[#allocation2 + $0x86] sm:$0xff]  ;;  %v6176_v0 = vld [vmem:[#allocation2 + $0xce] sm:$0xff] }
 0x1ae   : > { %8643 = vmatprep.mubr.msk.bf16.mxu0 %vm410_vm1, %v5561_v2  ;;  %v6168_v2 = vld [vmem:[#allocation2 + $0x8e] sm:$0xff]  ;;  %v6175_v52 = vld [vmem:[#allocation2 + $0xc6] sm:$0xff] }
 0x1af   : > { %v6225_v54 = vpack.c.bf16 %v6168_v2, %v6167_v47  ;;  %v6229_v59 = vpack.c.bf16 %v6176_v0, %v6175_v52  ;;  %v3485_v47 = vld [vmem:[#allocation2 + $0x163] sm:$0xff]  ;;  %v3486_v2 = vld [vmem:[#allocation2 + $0x16b] sm:$0xff] }
 0x1b0   : > { %v3489_v52 = vld [vmem:[#allocation2 + $0x183] sm:$0xff]  ;;  %v3490_v0 = vld [vmem:[#allocation2 + $0x18b] sm:$0xff] }
 0x1b3   : > { %8348 = vmatmul.mubr.msk.bf16.gmra.mrb[8].mxu1 %vm410_vm1, %v10166_v1  ;;  %v5527_v1 = vld [vmem:[#allocation2 + $0x1b5] sm:$0xff] }
 0x1b4   : > { %8351 = vmatprep.mubr.msk.bf16.mxu1 %vm410_vm1, %v10176_v10  ;;  %v5528_v10 = vld [vmem:[#allocation2 + $0x1bd] sm:$0xff] }
 0x1b5   : > { %8644 = vmatmul.mubr.msk.bf16.gmra.mrb[40].mxu0 %vm410_vm1, %v5562_v11  ;;  %v5566_v28 = vpack.c.bf16 %v5528_v10, %v5527_v1 }
 0x1b6   : > { %8647 = vmatprep.mubr.msk.bf16.mxu0 %vm410_vm1, %v5563_v15  ;;  %v6227_v15 = vpack.c.bf16 %v6172_v58, %v6171_v43  ;;  %v6199_v43 = vld [vmem:[#allocation2 + $0x186] sm:$0xff]  ;;  %v6200_v58 = vld [vmem:[#allocation2 + $0x18e] sm:$0xff] }
 0x1bb   : > { %8352 = vmatmul.mubr.msk.bf16.gmra.mrb[12].mxu1 %vm410_vm1, %v10178_v5  ;;  %v5531_v5 = vld [vmem:[#allocation2 + $0x1d5] sm:$0xff] }
 0x1bc   : > { %8355 = vmatprep.mubr.msk.bf16.mxu1 %vm410_vm1, %v10188_v16  ;;  %v5532_v16 = vld [vmem:[#allocation2 + $0x1dd] sm:$0xff] }
 0x1bd   : > { %8648 = vmatmul.mubr.msk.bf16.gmra.mrb[44].mxu0 %vm410_vm1, %v5564_v19  ;;  %v5568_v33 = vpack.c.bf16 %v5532_v16, %v5531_v5  ;;  %v6179_v19 = vld [vmem:[#allocation2 + $0xe6] sm:$0xff]  ;;  %v6185_v16 = vld [vmem:[#allocation2 + $0x116] sm:$0xff] }
 0x1be   : > { %8651 = vmatprep.mubr.msk.bf16.mxu0 %vm410_vm1, %v5565_v22  ;;  %v6180_v22 = vld [vmem:[#allocation2 + $0xee] sm:$0xff] }
 0x1bf   : > { %v6231_v10 = vpack.c.bf16 %v6180_v22, %v6179_v19  ;;  %v2828_v5 = vld [vmem:[#allocation2 + $0x20a] sm:$0xff] }
 0x1c0   : > { %v6203_v19 = vld [vmem:[#allocation2 + $0x1a6] sm:$0xff]  ;;  %v6204_v22 = vld [vmem:[#allocation2 + $0x1ae] sm:$0xff] }
 0x1c3   : > { %8356 = vmatmul.mubr.msk.bf16.gmra.mrb[16].mxu1 %vm410_vm1, %v10190_v63  ;;  %v5535_v63 = vld [vmem:[#allocation2 + $0x1f5] sm:$0xff] }
 0x1c4   : > { %8359 = vmatprep.mubr.msk.bf16.mxu1 %vm410_vm1, %v10200_v21  ;;  %v5536_v21 = vld [vmem:[#allocation2 + $0x1fd] sm:$0xff] }
 0x1c5   : > { %8652 = vmatmul.mubr.msk.bf16.gmra.mrb[48].mxu0 %vm410_vm1, %v5566_v28  ;;  %v5570_v44 = vpack.c.bf16 %v5536_v21, %v5535_v63 }
 0x1c6   : > { %8655 = vmatprep.mubr.msk.bf16.mxu0 %vm410_vm1, %v5567_v24  ;;  %v6233_v24 = vpack.c.bf16 %v6184_v9, %v6183_v14  ;;  %v3493_v14 = vld [vmem:[#allocation2 + $0x1a3] sm:$0xff]  ;;  %v3494_v9 = vld [vmem:[#allocation2 + $0x1ab] sm:$0xff] }
 0x1c7   : > { %v3532_v29 = vpack.c.bf16 %v3494_v9, %v3493_v14 }
 0x1cb   : > { %8360 = vmatmul.mubr.msk.bf16.gmra.mrb[20].mxu1 %vm410_vm1, %v10202_v12  ;;  %v5539_v12 = vld [vmem:[#allocation2 + $0x215] sm:$0xff] }
 0x1cc   : > { %8363 = vmatprep.mubr.msk.bf16.mxu1 %vm410_vm1, %v10212_v50  ;;  %v5540_v50 = vld [vmem:[#allocation2 + $0x21d] sm:$0xff] }
 0x1cd   : > { %8656 = vmatmul.mubr.msk.bf16.gmra.mrb[52].mxu0 %vm410_vm1, %v5568_v33  ;;  %v5572_v51 = vpack.c.bf16 %v5540_v50, %v5539_v12  ;;  %v6187_v33 = vld [vmem:[#allocation2 + $0x126] sm:$0xff]  ;;  %v3479_v12 = vld [vmem:[#allocation2 + $0x133] sm:$0xff]  ;;  %v3480_v50 = vld [vmem:[#allocation2 + $0x13b] sm:$0xff] }
 0x1ce   : > { %8659 = vmatprep.mubr.msk.bf16.mxu0 %vm410_vm1, %v5569_v18  ;;  %v6188_v18 = vld [vmem:[#allocation2 + $0x12e] sm:$0xff] }
 0x1cf   : > { %v6235_v42 = vpack.c.bf16 %v6188_v18, %v6187_v33 }
 0x1d3   : > { %8364 = vmatmul.mubr.msk.bf16.gmra.mrb[24].mxu1 %vm410_vm1, %v10214_v27  ;;  %v6157_v27 = vld [vmem:[#allocation2 + $0x36] sm:$0xff] }
 0x1d4   : > { %8367 = vmatprep.mubr.msk.bf16.mxu1 %vm410_vm1, %v10224_v34  ;;  %v6158_v34 = vld [vmem:[#allocation2 + $0x3e] sm:$0xff] }
 0x1d5   : > { %8660 = vmatmul.mubr.msk.bf16.gmra.mrb[56].mxu0 %vm410_vm1, %v5570_v44  ;;  %v6220_v23 = vpack.c.bf16 %v6158_v34, %v6157_v27  ;;  %v6189_v44 = vld [vmem:[#allocation2 + $0x136] sm:$0xff]  ;;  %v3525_v27 = vpack.c.bf16 %v3480_v50, %v3479_v12  ;;  %v6237_v34 = vpack.c.bf16 %v6192_v55, %v6191_v48 }
 0x1d6   : > { %8663 = vmatprep.mubr.msk.bf16.mxu0 %vm410_vm1, %v5571_v46  ;;  %v6190_v46 = vld [vmem:[#allocation2 + $0x13e] sm:$0xff] }
 0x1db   : > { %8368 = vmatmul.mubr.msk.bf16.gmra.mrb[28].mxu1 %vm410_vm1, %v10226_v37  ;;  %v6161_v37 = vld [vmem:[#allocation2 + $0x56] sm:$0xff] }
 0x1dc   : > { %8371 = vmatprep.mubr.msk.bf16.mxu1 %vm410_vm1, %v10234_v49  ;;  %v6162_v49 = vld [vmem:[#allocation2 + $0x5e] sm:$0xff] }
 0x1dd   : > { %8664 = vmatmul.mubr.msk.bf16.gmra.mrb[60].mxu0 %vm410_vm1, %v5572_v51  ;;  %v6222_v62 = vpack.c.bf16 %v6162_v49, %v6161_v37  ;;  %v3483_v37 = vld [vmem:[#allocation2 + $0x153] sm:$0xff]  ;;  %v3484_v49 = vld [vmem:[#allocation2 + $0x15b] sm:$0xff] }
 0x1de   : > { %8669 = vmatprep.mubr.msk.bf16.mxu0 %vm410_vm1, %v6219_v6  ;;  %v6236_v6 = vpack.c.bf16 %v6190_v46, %v6189_v44  ;;  %v6211_v44 = vld [vmem:[#allocation2 + $0x1e6] sm:$0xff]  ;;  %v6212_v46 = vld [vmem:[#allocation2 + $0x1ee] sm:$0xff] }
 0x1df   : > { %v6247_v55 = vpack.c.bf16 %v6212_v46, %v6211_v44 }
 0x1e3   : > { %8372 = vmatmul.mubr.msk.bf16.gmra.mrb[32].mxu1 %vm410_vm1, %v10236_v4  ;;  %v6165_v4 = vld [vmem:[#allocation2 + $0x76] sm:$0xff] }
 0x1e4   : > { %8375 = vmatprep.mubr.msk.bf16.mxu1 %vm410_vm1, %v10246_v61  ;;  %v6166_v61 = vld [vmem:[#allocation2 + $0x7e] sm:$0xff] }
 0x1e5   : > { %8670 = vmatmul.mubr.msk.bf16.vlgmr.msra.gmra.mrb[0].mxu0 %vm410_vm1, %v6220_v23  ;;  %v6224_v3 = vpack.c.bf16 %v6166_v61, %v6165_v4  ;;  %v6193_v23 = vld [vmem:[#allocation2 + $0x156] sm:$0xff]  ;;  %v3527_v4 = vpack.c.bf16 %v3484_v49, %v3483_v37  ;;  %v6239_v61 = vpack.c.bf16 %v6196_v45, %v6195_v40 }
 0x1e6   : > { %8673 = vmatprep.mubr.msk.bf16.mxu0 %vm410_vm1, %v6221_v35  ;;  %v6194_v35 = vld [vmem:[#allocation2 + $0x15e] sm:$0xff] }
 0x1eb   : > { %8376 = vmatmul.mubr.msk.bf16.gmra.mrb[36].mxu1 %vm410_vm1, %v10248_v56  ;;  %v6169_v56 = vld [vmem:[#allocation2 + $0x96] sm:$0xff] }
 0x1ec   : > { %8379 = vmatprep.mubr.msk.bf16.mxu1 %vm410_vm1, %v10256_v31  ;;  %v6170_v31 = vld [vmem:[#allocation2 + $0x9e] sm:$0xff] }
 0x1ed   : > { %8674 = vmatmul.mubr.msk.bf16.gmra.mrb[4].mxu0 %vm410_vm1, %v6222_v62  ;;  %v6226_v11 = vpack.c.bf16 %v6170_v31, %v6169_v56  ;;  %v3526_v62 = vpack.c.bf16 %v3482_v25, %v3481_v20  ;;  %v3487_v56 = vld [vmem:[#allocation2 + $0x173] sm:$0xff]  ;;  %v3488_v31 = vld [vmem:[#allocation2 + $0x17b] sm:$0xff] }
 0x1ee   : > { %8677 = vmatprep.mubr.msk.bf16.mxu0 %vm410_vm1, %v6223_v39  ;;  %v6238_v39 = vpack.c.bf16 %v6194_v35, %v6193_v23  ;;  %v3503_v20 = vld [vmem:[#allocation2 + $0x1f3] sm:$0xff]  ;;  %v3504_v25 = vld [vmem:[#allocation2 + $0x1fb] sm:$0xff]  ;;  %v6215_v23 = vld [vmem:[#allocation2 + $0x206] sm:$0xff] }
 0x1ef   : > { %v6216_v35 = vld [vmem:[#allocation2 + $0x20e] sm:$0xff]  ;;  %v3537_v40 = vpack.c.bf16 %v3504_v25, %v3503_v20 }
 0x1f0   : > { %v6249_v45 = vpack.c.bf16 %v6216_v35, %v6215_v23 }
 0x1f3   : > { %8380 = vmatmul.mubr.msk.bf16.gmra.mrb[40].mxu1 %vm410_vm1, %v10258_v41  ;;  %v6173_v41 = vld [vmem:[#allocation2 + $0xb6] sm:$0xff] }
 0x1f4   : > { %8383 = vmatprep.mubr.msk.bf16.mxu1 %vm410_vm1, %v10266_v36  ;;  %v6174_v36 = vld [vmem:[#allocation2 + $0xbe] sm:$0xff] }
 0x1f5   : > { %8678 = vmatmul.mubr.msk.bf16.gmra.mrb[8].mxu0 %vm410_vm1, %v6224_v3  ;;  %v6228_v17 = vpack.c.bf16 %v6174_v36, %v6173_v41  ;;  %v6197_v3 = vld [vmem:[#allocation2 + $0x176] sm:$0xff]  ;;  %v3529_v41 = vpack.c.bf16 %v3488_v31, %v3487_v56  ;;  %v6241_v36 = vpack.c.bf16 %v6200_v58, %v6199_v43 }
 0x1f6   : > { %8681 = vmatprep.mubr.msk.bf16.mxu0 %vm410_vm1, %v6225_v54  ;;  %v6198_v54 = vld [vmem:[#allocation2 + $0x17e] sm:$0xff] }
 0x1fb   : > { %8384 = vmatmul.mubr.msk.bf16.gmra.mrb[44].mxu1 %vm410_vm1, %v10268_v30  ;;  %v6177_v30 = vld [vmem:[#allocation2 + $0xd6] sm:$0xff] }
 0x1fc   : > { %8387 = vmatprep.mubr.msk.bf16.mxu1 %vm410_vm1, %v10276_v57  ;;  %v6178_v57 = vld [vmem:[#allocation2 + $0xde] sm:$0xff] }
 0x1fd   : > { %8682 = vmatmul.mubr.msk.bf16.gmra.mrb[12].mxu0 %vm410_vm1, %v6226_v11  ;;  %v6230_v1 = vpack.c.bf16 %v6178_v57, %v6177_v30  ;;  %v3528_v11 = vpack.c.bf16 %v3486_v2, %v3485_v47  ;;  %v3491_v30 = vld [vmem:[#allocation2 + $0x193] sm:$0xff]  ;;  %v3492_v57 = vld [vmem:[#allocation2 + $0x19b] sm:$0xff] }
 0x1fe   : > { %8685 = vmatprep.mubr.msk.bf16.mxu0 %vm410_vm1, %v6227_v15  ;;  %v6240_v15 = vpack.c.bf16 %v6198_v54, %v6197_v3 }
 0x203   : > { %8388 = vmatmul.mubr.msk.bf16.gmra.mrb[48].mxu1 %vm410_vm1, %v10278_v60  ;;  %v6181_v60 = vld [vmem:[#allocation2 + $0xf6] sm:$0xff] }
 0x204   : > { %8391 = vmatprep.mubr.msk.bf16.mxu1 %vm410_vm1, %v10286_v7  ;;  %v6182_v7 = vld [vmem:[#allocation2 + $0xfe] sm:$0xff] }
 0x205   : > { %8686 = vmatmul.mubr.msk.bf16.gmra.mrb[16].mxu0 %vm410_vm1, %v6228_v17  ;;  %v6232_v28 = vpack.c.bf16 %v6182_v7, %v6181_v60  ;;  %v6201_v17 = vld [vmem:[#allocation2 + $0x196] sm:$0xff]  ;;  %v3531_v60 = vpack.c.bf16 %v3492_v57, %v3491_v30  ;;  %v6243_v7 = vpack.c.bf16 %v6204_v22, %v6203_v19 }
 0x206   : > { %8689 = vmatprep.mubr.msk.bf16.mxu0 %vm410_vm1, %v6229_v59  ;;  %v6202_v59 = vld [vmem:[#allocation2 + $0x19e] sm:$0xff] }
 0x20b   : > { %8392 = vmatmul.mubr.msk.bf16.gmra.mrb[52].mxu1 %vm410_vm1, %v10288_v13  ;;  %v2827_v13 = vld [vmem:[#allocation2 + $0x202] sm:$0xff] }
 0x20c   : > { %8395 = vmatprep.mubr.msk.bf16.mxu1 %vm410_vm1, %v10296_v8  ;;  %v6186_v8 = vld [vmem:[#allocation2 + $0x11e] sm:$0xff]  ;;  %v2860_v63 = vpack.c.bf16 %v2828_v5, %v2827_v13  ;;  %v3495_v13 = vld [vmem:[#allocation2 + $0x1b3] sm:$0xff] }
 0x20d   : > { %8690 = vmatmul.mubr.msk.bf16.gmra.mrb[20].mxu0 %vm410_vm1, %v6230_v1  ;;  %v6234_v21 = vpack.c.bf16 %v6186_v8, %v6185_v16  ;;  %v3530_v1 = vpack.c.bf16 %v3490_v0, %v3489_v52  ;;  %v3496_v5 = vld [vmem:[#allocation2 + $0x1bb] sm:$0xff]  ;;  %v6207_v16 = vld [vmem:[#allocation2 + $0x1c6] sm:$0xff]  ;;  %v6208_v8 = vld [vmem:[#allocation2 + $0x1ce] sm:$0xff] }
 0x20e   : > { %8693 = vmatprep.mubr.msk.bf16.mxu0 %vm410_vm1, %v6231_v10  ;;  %v6242_v10 = vpack.c.bf16 %v6202_v59, %v6201_v17  ;;  %v3533_v33 = vpack.c.bf16 %v3496_v5, %v3495_v13  ;;  %v6245_v18 = vpack.c.bf16 %v6208_v8, %v6207_v16 }
 0x213   : > { %8396 = vmatmul.mubr.msk.bf16.gmra.mrb[56].mxu1 %vm410_vm1, %v10298_v26  ;;  %v3477_v26 = vld [vmem:[#allocation2 + $0x123] sm:$0xff] }
 0x214   : > { %8399 = vmatprep.mubr.msk.bf16.mxu1 %vm410_vm1, %v10306_v53  ;;  %v3478_v53 = vld [vmem:[#allocation2 + $0x12b] sm:$0xff] }
 0x215   : > { %8694 = vmatmul.mubr.msk.bf16.gmra.mrb[24].mxu0 %vm410_vm1, %v6232_v28  ;;  %v3524_v51 = vpack.c.bf16 %v3478_v53, %v3477_v26  ;;  %v6205_v28 = vld [vmem:[#allocation2 + $0x1b6] sm:$0xff] }
 0x216   : > { %8697 = vmatprep.mubr.msk.bf16.mxu0 %vm410_vm1, %v6233_v24  ;;  %v6206_v24 = vld [vmem:[#allocation2 + $0x1be] sm:$0xff]  ;;  %v3499_v26 = vld [vmem:[#allocation2 + $0x1d3] sm:$0xff] }
 0x217   : > { %v6244_v32 = vpack.c.bf16 %v6206_v24, %v6205_v28  ;;  %v3500_v53 = vld [vmem:[#allocation2 + $0x1db] sm:$0xff] }
 0x218   : > { %v3535_v48 = vpack.c.bf16 %v3500_v53, %v3499_v26 }
 0x21b   : > { %8400 = vmatmul.mubr.msk.bf16.gmra.mrb[60].mxu1 %vm410_vm1, %v2860_v63  ;;  %v3497_v63 = vld [vmem:[#allocation2 + $0x1c3] sm:$0xff] }
 0x21c   : > { %8437 = vmatprep.mubr.msk.bf16.mxu1 %vm410_vm1, %v3523_v38  ;;  %v6209_v38 = vld [vmem:[#allocation2 + $0x1d6] sm:$0xff] }
 0x21d   : > { %8698 = vmatmul.mubr.msk.bf16.gmra.mrb[28].mxu0 %vm410_vm1, %v6234_v21  ;;  %v3498_v21 = vld [vmem:[#allocation2 + $0x1cb] sm:$0xff] }
 0x21e   : > { %8701 = vmatprep.mubr.msk.bf16.mxu0 %vm410_vm1, %v6235_v42  ;;  %v6210_v42 = vld [vmem:[#allocation2 + $0x1de] sm:$0xff]  ;;  %v3534_v12 = vpack.c.bf16 %v3498_v21, %v3497_v63 }
 0x21f   : > { %v6246_v50 = vpack.c.bf16 %v6210_v42, %v6209_v38 }
 0x223   : > { %8438 = vmatmul.mubr.msk.bf16.vlgmr.msra.gmra.mrb[32].mxu1 %vm410_vm1, %v3524_v51  ;;  %v3501_v51 = vld [vmem:[#allocation2 + $0x1e3] sm:$0xff] }
 0x224   : > { %8441 = vmatprep.mubr.msk.bf16.mxu1 %vm410_vm1, %v3525_v27  ;;  %v6213_v27 = vld [vmem:[#allocation2 + $0x1f6] sm:$0xff] }
 0x225   : > { %8702 = vmatmul.mubr.msk.bf16.gmra.mrb[32].mxu0 %vm410_vm1, %v6236_v6  ;;  %v3502_v6 = vld [vmem:[#allocation2 + $0x1eb] sm:$0xff] }
 0x226   : > { %8705 = vmatprep.mubr.msk.bf16.mxu0 %vm410_vm1, %v6237_v34  ;;  %v6214_v34 = vld [vmem:[#allocation2 + $0x1fe] sm:$0xff]  ;;  %v3536_v37 = vpack.c.bf16 %v3502_v6, %v3501_v51 }
 0x227   : > { %v6248_v49 = vpack.c.bf16 %v6214_v34, %v6213_v27 }
 0x22b   : > { %8442 = vmatmul.mubr.msk.bf16.gmra.mrb[36].mxu1 %vm410_vm1, %v3526_v62  ;;  %v3505_v62 = vld [vmem:[#allocation2 + $0x203] sm:$0xff] }
 0x22c   : > { %8445 = vmatprep.mubr.msk.bf16.mxu1 %vm410_vm1, %v3527_v4  ;;  %v6217_v4 = vld [vmem:[#allocation2 + $0x216] sm:$0xff] }
 0x22d   : > { %8706 = vmatmul.mubr.msk.bf16.gmra.mrb[36].mxu0 %vm410_vm1, %v6238_v39  ;;  %v3506_v39 = vld [vmem:[#allocation2 + $0x20b] sm:$0xff] }
 0x22e   : > { %8709 = vmatprep.mubr.msk.bf16.mxu0 %vm410_vm1, %v6239_v61  ;;  %v6218_v61 = vld [vmem:[#allocation2 + $0x21e] sm:$0xff]  ;;  %v3538_v47 = vpack.c.bf16 %v3506_v39, %v3505_v62 }
 0x22f   : > { %v6250_v2 = vpack.c.bf16 %v6218_v61, %v6217_v4 }
 0x233   : > { %8446 = vmatmul.mubr.msk.bf16.gmra.mrb[40].mxu1 %vm410_vm1, %v3528_v11 }
 0x234   : > { %8449 = vmatprep.mubr.msk.bf16.mxu1 %vm410_vm1, %v3529_v41 }
 0x235   : > { %8710 = vmatmul.mubr.msk.bf16.gmra.mrb[40].mxu0 %vm410_vm1, %v6240_v15 }
 0x236   : > { %8713 = vmatprep.mubr.msk.bf16.mxu0 %vm410_vm1, %v6241_v36 }
 0x23b   : > { %8450 = vmatmul.mubr.msk.bf16.gmra.mrb[44].mxu1 %vm410_vm1, %v3530_v1 }
 0x23c   : > { %8453 = vmatprep.mubr.msk.bf16.mxu1 %vm410_vm1, %v3531_v60 }
 0x23d   : > { %8714 = vmatmul.mubr.msk.bf16.gmra.mrb[44].mxu0 %vm410_vm1, %v6242_v10 }
 0x23e   : > { %8717 = vmatprep.mubr.msk.bf16.mxu0 %vm410_vm1, %v6243_v7 }
 0x243   : > { %8454 = vmatmul.mubr.msk.bf16.gmra.mrb[48].mxu1 %vm410_vm1, %v3532_v29 }
 0x244   : > { %8457 = vmatprep.mubr.msk.bf16.mxu1 %vm410_vm1, %v3533_v33 }
 0x245   : > { %8718 = vmatmul.mubr.msk.bf16.gmra.mrb[48].mxu0 %vm410_vm1, %v6244_v32 }
 0x246   : > { %8721 = vmatprep.mubr.msk.bf16.mxu0 %vm410_vm1, %v6245_v18  ;;  %v10492_v18 = vld [vmem:[%s10663_s3] ss:$0 sm:$0xff] }
 0x24b   : > { %8458 = vmatmul.mubr.msk.bf16.gmra.mrb[52].mxu1 %vm410_vm1, %v3534_v12 }
 0x24c   : > { %8461 = vmatprep.mubr.msk.bf16.mxu1 %vm410_vm1, %v3535_v48 }
 0x24d   : > { %8722 = vmatmul.mubr.msk.bf16.gmra.mrb[52].mxu0 %vm410_vm1, %v6246_v50 }
 0x24e   : > { %8725 = vmatprep.mubr.msk.bf16.mxu0 %vm410_vm1, %v6247_v55 }
 0x253   : > { %8462 = vmatmul.mubr.msk.bf16.gmra.mrb[56].mxu1 %vm410_vm1, %v3536_v37 }
 0x254   : > { %8465 = vmatprep.mubr.msk.bf16.mxu1 %vm410_vm1, %v3537_v40 }
 0x255   : > { %8726 = vmatmul.mubr.msk.bf16.gmra.mrb[56].mxu0 %vm410_vm1, %v6248_v49 }
 0x256   : > { %8729 = vmatprep.mubr.msk.bf16.mxu0 %vm410_vm1, %v6249_v45 }
 0x25b   : > { %8466 = vmatmul.mubr.msk.bf16.gmra.mrb[60].mxu1 %vm410_vm1, %v3538_v47 }
 0x25d   : > { %8730 = vmatmul.mubr.msk.bf16.gmra.mrb[60].mxu0 %vm410_vm1, %v6250_v2 }
 0x276   : > { %v8341_v3 = vpop.f32.mrb[0].mxu1 }
 0x277   : > { %v3060_v54 = vpop.f32.mrb[1].mxu1 }
 0x278   : > { %v8342_v56 = vpop.f32.mrb[2].mxu1 }
 0x279   : > { %v3063_v31 = vpop.f32.mrb[3].mxu1 }
 0x27e   : > { %v8345_v43 = vpop.f32.mrb[4].mxu1 }
 0x27f   : > { %v3076_v58 = vpop.f32.mrb[5].mxu1 }
 0x280   : > { %v8346_v11 = vpop.f32.mrb[6].mxu1 }
 0x281   : > { %v3079_v15 = vpop.f32.mrb[7].mxu1 }
 0x286   : > { %v10439_v41 = vpop.f32.mrb[8].mxu1 }
 0x287   : > { %v10441_v36 = vpop.f32.mrb[9].mxu1 }
 0x288   : > { %v10443_v52 = vpop.f32.mrb[10].mxu1 }
 0x289   : > { %v10445_v0 = vpop.f32.mrb[11].mxu1 }
 0x28e   : > { %v10447_v17 = vpop.f32.mrb[12].mxu1 }
 0x28f   : > { %v10449_v59 = vpop.f32.mrb[13].mxu1 }
 0x290   : > { %v10451_v30 = vpop.f32.mrb[14].mxu1 }
 0x291   : > { %v10453_v57 = vpop.f32.mrb[15].mxu1 }
 0x296   : > { %v10455_v19 = vpop.f32.mrb[16].mxu1 }
 0x297   : > { %v10457_v22 = vpop.f32.mrb[17].mxu1 }
 0x298   : > { %v10459_v1 = vpop.f32.mrb[18].mxu1 }
 0x299   : > { %v10461_v10 = vpop.f32.mrb[19].mxu1 }
 0x29e   : > { %v10463_v60 = vpop.f32.mrb[20].mxu1 }
 0x29f   : > { %v10465_v7 = vpop.f32.mrb[21].mxu1 }
 0x2a0   : > { %v10467_v14 = vpop.f32.mrb[22].mxu1 }
 0x2a1   : > { %v10469_v9 = vpop.f32.mrb[23].mxu1 }
 0x2a6   : > { %v10471_v28 = vpop.f32.mrb[24].mxu1 }
 0x2a7   : > { %v10473_v24 = vpop.f32.mrb[25].mxu1 }
 0x2a8   : > { %v10475_v13 = vpop.f32.mrb[26].mxu1 }
 0x2a9   : > { %v10477_v5 = vpop.f32.mrb[27].mxu1 }
 0x2ae   : > { %v10479_v16 = vpop.f32.mrb[28].mxu1 }
 0x2af   : > { %v10481_v8 = vpop.f32.mrb[29].mxu1 }
 0x2b0   : > { %v10484_v29 = vpop.f32.mrb[30].mxu1 }
 0x2b1   : > { %v10486_v32 = vpop.f32.mrb[31].mxu1 }
 0x2b8   : > { %v8671_v33 = vpop.f32.mrb[0].mxu0 }
 0x2b9   : > { %v8740_v63 = vadd.f32 %v8671_v33, %v8341_v3  ;;  %v6450_v21 = vpop.f32.mrb[1].mxu0 }
 0x2ba   : > { %v8746_v38 = vadd.f32 %v6450_v21, %v3060_v54  ;;  %v8672_v42 = vpop.f32.mrb[2].mxu0 }
 0x2bb   : > { %v6906_v26 = vadd.f32 %v8740_v63, %v10492_v18  ;;  %v8752_v53 = vadd.f32 %v8672_v42, %v8342_v56  ;;  %v6453_v44 = vpop.f32.mrb[3].mxu0 }
 0x2bc   : > { %v6904_v46 = vadd.f32 %v8746_v38, %v10492_v18  ;;  %v8758_v12 = vadd.f32 %v6453_v44, %v3063_v31 }
 0x2bd   : > { %v6970_v50 = vmax.f32 %v6906_v26, 0.0  ;;  %v6907_v48 = vadd.f32 %v8752_v53, %v10492_v18 }
 0x2be   : > { %v6968_v55 = vmax.f32 %v6904_v46, 0.0  ;;  %v6905_v51 = vadd.f32 %v8758_v12, %v10492_v18 }
 0x2bf   : > { %7034 = vst [vmem:[%s10498_s7 + $0x10] sm:$0xff] %v6970_v50  ;;  %v6971_v6 = vmax.f32 %v6907_v48, 0.0 }
 0x2c0   : > { %7032 = vst [vmem:[%s10498_s7] sm:$0xff] %v6968_v55  ;;  %v6969_v27 = vmax.f32 %v6905_v51, 0.0  ;;  %v8675_v34 = vpop.f32.mrb[4].mxu0 }
 0x2c1   : > { %7035 = vst [vmem:[%s10498_s7 + $0x18] sm:$0xff] %v6971_v6  ;;  %v8764_v20 = vadd.f32 %v8675_v34, %v8345_v43  ;;  %v6466_v25 = vpop.f32.mrb[5].mxu0 }
 0x2c2   : > { %7033 = vst [vmem:[%s10498_s7 + $0x8] sm:$0xff] %v6969_v27  ;;  %v8770_v23 = vadd.f32 %v6466_v25, %v3076_v58  ;;  %v8676_v35 = vpop.f32.mrb[6].mxu0 }
 0x2c3   : > { %v6910_v37 = vadd.f32 %v8764_v20, %v10492_v18  ;;  %v8776_v49 = vadd.f32 %v8676_v35, %v8346_v11  ;;  %v6469_v40 = vpop.f32.mrb[7].mxu0 }
 0x2c4   : > { %v6908_v45 = vadd.f32 %v8770_v23, %v10492_v18  ;;  %v8782_v62 = vadd.f32 %v6469_v40, %v3079_v15 }
 0x2c5   : > { %v6974_v39 = vmax.f32 %v6910_v37, 0.0  ;;  %v6911_v4 = vadd.f32 %v8776_v49, %v10492_v18 }
 0x2c6   : > { %v6972_v61 = vmax.f32 %v6908_v45, 0.0  ;;  %v6909_v47 = vadd.f32 %v8782_v62, %v10492_v18 }
 0x2c7   : > { %7038 = vst [vmem:[%s10498_s7 + $0x30] sm:$0xff] %v6974_v39  ;;  %v6975_v2 = vmax.f32 %v6911_v4, 0.0 }
 0x2c8   : > { %7036 = vst [vmem:[%s10498_s7 + $0x20] sm:$0xff] %v6972_v61  ;;  %v6973_v3 = vmax.f32 %v6909_v47, 0.0  ;;  %v8679_v54 = vpop.f32.mrb[8].mxu0 }
 0x2c9   : > { %7039 = vst [vmem:[%s10498_s7 + $0x38] sm:$0xff] %v6975_v2  ;;  %v8788_v56 = vadd.f32 %v8679_v54, %v10439_v41  ;;  %v6482_v31 = vpop.f32.mrb[9].mxu0 }
 0x2ca   : > { %7037 = vst [vmem:[%s10498_s7 + $0x28] sm:$0xff] %v6973_v3  ;;  %v8794_v43 = vadd.f32 %v6482_v31, %v10441_v36  ;;  %v8680_v58 = vpop.f32.mrb[10].mxu0 }
 0x2cb   : > { %v6914_v11 = vadd.f32 %v8788_v56, %v10492_v18  ;;  %v8800_v15 = vadd.f32 %v8680_v58, %v10443_v52  ;;  %v6485_v33 = vpop.f32.mrb[11].mxu0 }
 0x2cc   : > { %v6912_v63 = vadd.f32 %v8794_v43, %v10492_v18  ;;  %v8806_v21 = vadd.f32 %v6485_v33, %v10445_v0 }
 0x2cd   : > { %v6978_v38 = vmax.f32 %v6914_v11, 0.0  ;;  %v6915_v41 = vadd.f32 %v8800_v15, %v10492_v18 }
 0x2ce   : > { %v6976_v42 = vmax.f32 %v6912_v63, 0.0  ;;  %v6913_v26 = vadd.f32 %v8806_v21, %v10492_v18 }
 0x2cf   : > { %7042 = vst [vmem:[%s10498_s7 + $0x50] sm:$0xff] %v6978_v38  ;;  %v6979_v36 = vmax.f32 %v6915_v41, 0.0 }
 0x2d0   : > { %7040 = vst [vmem:[%s10498_s7 + $0x40] sm:$0xff] %v6976_v42  ;;  %v6977_v53 = vmax.f32 %v6913_v26, 0.0  ;;  %v8683_v44 = vpop.f32.mrb[12].mxu0 }
 0x2d1   : > { %7043 = vst [vmem:[%s10498_s7 + $0x58] sm:$0xff] %v6979_v36  ;;  %v8812_v52 = vadd.f32 %v8683_v44, %v10447_v17  ;;  %v6498_v46 = vpop.f32.mrb[13].mxu0 }
 0x2d2   : > { %7041 = vst [vmem:[%s10498_s7 + $0x48] sm:$0xff] %v6977_v53  ;;  %v8818_v0 = vadd.f32 %v6498_v46, %v10449_v59  ;;  %v8684_v12 = vpop.f32.mrb[14].mxu0 }
 0x2d3   : > { %v6918_v50 = vadd.f32 %v8812_v52, %v10492_v18  ;;  %v8824_v48 = vadd.f32 %v8684_v12, %v10451_v30  ;;  %v6501_v55 = vpop.f32.mrb[15].mxu0 }
 0x2d4   : > { %v6916_v51 = vadd.f32 %v8818_v0, %v10492_v18  ;;  %v8830_v6 = vadd.f32 %v6501_v55, %v10453_v57 }
 0x2d5   : > { %v6982_v27 = vmax.f32 %v6918_v50, 0.0  ;;  %v6919_v17 = vadd.f32 %v8824_v48, %v10492_v18 }
 0x2d6   : > { %v6980_v34 = vmax.f32 %v6916_v51, 0.0  ;;  %v6917_v20 = vadd.f32 %v8830_v6, %v10492_v18 }
 0x2d7   : > { %7046 = vst [vmem:[%s10498_s7 + $0x70] sm:$0xff] %v6982_v27  ;;  %v6983_v59 = vmax.f32 %v6919_v17, 0.0 }
 0x2d8   : > { %7044 = vst [vmem:[%s10498_s7 + $0x60] sm:$0xff] %v6980_v34  ;;  %v6981_v25 = vmax.f32 %v6917_v20, 0.0  ;;  %v8687_v23 = vpop.f32.mrb[16].mxu0 }
 0x2d9   : > { %7047 = vst [vmem:[%s10498_s7 + $0x78] sm:$0xff] %v6983_v59  ;;  %v8836_v30 = vadd.f32 %v8687_v23, %v10455_v19  ;;  %v6514_v35 = vpop.f32.mrb[17].mxu0 }
 0x2da   : > { %7045 = vst [vmem:[%s10498_s7 + $0x68] sm:$0xff] %v6981_v25  ;;  %v8842_v57 = vadd.f32 %v6514_v35, %v10457_v22  ;;  %v8688_v37 = vpop.f32.mrb[18].mxu0 }
 0x2db   : > { %v6922_v49 = vadd.f32 %v8836_v30, %v10492_v18  ;;  %v8848_v40 = vadd.f32 %v8688_v37, %v10459_v1  ;;  %v6517_v45 = vpop.f32.mrb[19].mxu0 }
 0x2dc   : > { %v6920_v62 = vadd.f32 %v8842_v57, %v10492_v18  ;;  %v8854_v39 = vadd.f32 %v6517_v45, %v10461_v10 }
 0x2dd   : > { %v6986_v4 = vmax.f32 %v6922_v49, 0.0  ;;  %v6923_v19 = vadd.f32 %v8848_v40, %v10492_v18 }
 0x2de   : > { %v6984_v61 = vmax.f32 %v6920_v62, 0.0  ;;  %v6921_v47 = vadd.f32 %v8854_v39, %v10492_v18 }
 0x2df   : > { %7050 = vst [vmem:[%s10498_s7 + $0x90] sm:$0xff] %v6986_v4  ;;  %v6987_v22 = vmax.f32 %v6923_v19, 0.0 }
 0x2e0   : > { %7048 = vst [vmem:[%s10498_s7 + $0x80] sm:$0xff] %v6984_v61  ;;  %v6985_v2 = vmax.f32 %v6921_v47, 0.0  ;;  %v8691_v3 = vpop.f32.mrb[20].mxu0 }
 0x2e1   : > { %7051 = vst [vmem:[%s10498_s7 + $0x98] sm:$0xff] %v6987_v22  ;;  %v8860_v1 = vadd.f32 %v8691_v3, %v10463_v60  ;;  %v6530_v54 = vpop.f32.mrb[21].mxu0 }
 0x2e2   : > { %7049 = vst [vmem:[%s10498_s7 + $0x88] sm:$0xff] %v6985_v2  ;;  %v8866_v10 = vadd.f32 %v6530_v54, %v10465_v7  ;;  %v8692_v56 = vpop.f32.mrb[22].mxu0 }
 0x2e3   : > { %v6926_v31 = vadd.f32 %v8860_v1, %v10492_v18  ;;  %v8872_v43 = vadd.f32 %v8692_v56, %v10467_v14  ;;  %v6533_v58 = vpop.f32.mrb[23].mxu0 }
 0x2e4   : > { %v6924_v11 = vadd.f32 %v8866_v10, %v10492_v18  ;;  %v8878_v15 = vadd.f32 %v6533_v58, %v10469_v9 }
 0x2e5   : > { %v6990_v33 = vmax.f32 %v6926_v31, 0.0  ;;  %v6927_v60 = vadd.f32 %v8872_v43, %v10492_v18 }
 0x2e6   : > { %v6988_v63 = vmax.f32 %v6924_v11, 0.0  ;;  %v6925_v21 = vadd.f32 %v8878_v15, %v10492_v18 }
 0x2e7   : > { %7054 = vst [vmem:[%s10498_s7 + $0xb0] sm:$0xff] %v6990_v33  ;;  %v6991_v7 = vmax.f32 %v6927_v60, 0.0 }
 0x2e8   : > { %7052 = vst [vmem:[%s10498_s7 + $0xa0] sm:$0xff] %v6988_v63  ;;  %v6989_v38 = vmax.f32 %v6925_v21, 0.0  ;;  %v8695_v41 = vpop.f32.mrb[24].mxu0 }
 0x2e9   : > { %7055 = vst [vmem:[%s10498_s7 + $0xb8] sm:$0xff] %v6991_v7  ;;  %v8884_v14 = vadd.f32 %v8695_v41, %v10471_v28  ;;  %v6546_v42 = vpop.f32.mrb[25].mxu0 }
 0x2ea   : > { %7053 = vst [vmem:[%s10498_s7 + $0xa8] sm:$0xff] %v6989_v38  ;;  %v8890_v9 = vadd.f32 %v6546_v42, %v10473_v24  ;;  %v8696_v26 = vpop.f32.mrb[26].mxu0 }
 0x2eb   : > { %v6930_v36 = vadd.f32 %v8884_v14, %v10492_v18  ;;  %v8896_v53 = vadd.f32 %v8696_v26, %v10475_v13  ;;  %v6549_v44 = vpop.f32.mrb[27].mxu0 }
 0x2ec   : > { %v6928_v52 = vadd.f32 %v8890_v9, %v10492_v18  ;;  %v8902_v46 = vadd.f32 %v6549_v44, %v10477_v5 }
 0x2ed   : > { %v6994_v0 = vmax.f32 %v6930_v36, 0.0  ;;  %v6931_v28 = vadd.f32 %v8896_v53, %v10492_v18 }
 0x2ee   : > { %v6992_v12 = vmax.f32 %v6928_v52, 0.0  ;;  %v6929_v50 = vadd.f32 %v8902_v46, %v10492_v18 }
 0x2ef   : > { %7058 = vst [vmem:[%s10498_s7 + $0xd0] sm:$0xff] %v6994_v0  ;;  %v6995_v24 = vmax.f32 %v6931_v28, 0.0 }
 0x2f0   : > { %7056 = vst [vmem:[%s10498_s7 + $0xc0] sm:$0xff] %v6992_v12  ;;  %v6993_v48 = vmax.f32 %v6929_v50, 0.0  ;;  %v8699_v55 = vpop.f32.mrb[28].mxu0 }
 0x2f1   : > { %7059 = vst [vmem:[%s10498_s7 + $0xd8] sm:$0xff] %v6995_v24  ;;  %v8908_v13 = vadd.f32 %v8699_v55, %v10479_v16  ;;  %v6562_v51 = vpop.f32.mrb[29].mxu0 }
 0x2f2   : > { %7057 = vst [vmem:[%s10498_s7 + $0xc8] sm:$0xff] %v6993_v48  ;;  %v8914_v5 = vadd.f32 %v6562_v51, %v10481_v8  ;;  %v8700_v6 = vpop.f32.mrb[30].mxu0 }
 0x2f3   : > { %v6934_v27 = vadd.f32 %v8908_v13, %v10492_v18  ;;  %v8920_v17 = vadd.f32 %v8700_v6, %v10484_v29  ;;  %v6565_v34 = vpop.f32.mrb[31].mxu0 }
 0x2f4   : > { %v6932_v20 = vadd.f32 %v8914_v5, %v10492_v18  ;;  %v8926_v59 = vadd.f32 %v6565_v34, %v10486_v32 }
 0x2f5   : > { %v6998_v25 = vmax.f32 %v6934_v27, 0.0  ;;  %v6935_v16 = vadd.f32 %v8920_v17, %v10492_v18 }
 0x2f6   : > { %v6996_v23 = vmax.f32 %v6932_v20, 0.0  ;;  %v6933_v30 = vadd.f32 %v8926_v59, %v10492_v18  ;;  %v8439_v35 = vpop.f32.mrb[32].mxu1 }
 0x2f7   : > { %7062 = vst [vmem:[%s10498_s7 + $0xf0] sm:$0xff] %v6998_v25  ;;  %v6999_v8 = vmax.f32 %v6935_v16, 0.0  ;;  %v3866_v49 = vpop.f32.mrb[33].mxu1 }
 0x2f8   : > { %7060 = vst [vmem:[%s10498_s7 + $0xe0] sm:$0xff] %v6996_v23  ;;  %v6997_v57 = vmax.f32 %v6933_v30, 0.0  ;;  %v8703_v37 = vpop.f32.mrb[32].mxu0  ;;  %v8440_v40 = vpop.f32.mrb[34].mxu1 }
 0x2f9   : > { %7063 = vst [vmem:[%s10498_s7 + $0xf8] sm:$0xff] %v6999_v8  ;;  %v6578_v29 = vpop.f32.mrb[33].mxu0  ;;  %v8932_v45 = vadd.f32 %v8703_v37, %v8439_v35  ;;  %v3869_v62 = vpop.f32.mrb[35].mxu1 }
 0x2fa   : > { %7061 = vst [vmem:[%s10498_s7 + $0xe8] sm:$0xff] %v6997_v57  ;;  %v8704_v32 = vpop.f32.mrb[34].mxu0  ;;  %v8938_v39 = vadd.f32 %v6578_v29, %v3866_v49 }
 0x2fb   : > { %v6581_v4 = vpop.f32.mrb[35].mxu0  ;;  %v6938_v19 = vadd.f32 %v8932_v45, %v10492_v18  ;;  %v8944_v61 = vadd.f32 %v8704_v32, %v8440_v40 }
 0x2fc   : > { %v6936_v47 = vadd.f32 %v8938_v39, %v10492_v18  ;;  %v8950_v22 = vadd.f32 %v6581_v4, %v3869_v62 }
 0x2fd   : > { %v7002_v2 = vmax.f32 %v6938_v19, 0.0  ;;  %v6939_v3 = vadd.f32 %v8944_v61, %v10492_v18 }
 0x2fe   : > { %v7000_v1 = vmax.f32 %v6936_v47, 0.0  ;;  %v6937_v54 = vadd.f32 %v8950_v22, %v10492_v18  ;;  %v8443_v10 = vpop.f32.mrb[36].mxu1 }
 0x2ff   : > { %7066 = vst [vmem:[%s10498_s7 + $0x110] sm:$0xff] %v7002_v2  ;;  %v7003_v56 = vmax.f32 %v6939_v3, 0.0  ;;  %v3882_v43 = vpop.f32.mrb[37].mxu1 }
 0x300   : > { %v8707_v31 = vpop.f32.mrb[36].mxu0  ;;  %7064 = vst [vmem:[%s10498_s7 + $0x100] sm:$0xff] %v7000_v1  ;;  %v7001_v58 = vmax.f32 %v6937_v54, 0.0  ;;  %v8444_v15 = vpop.f32.mrb[38].mxu1 }
 0x301   : > { %v6594_v11 = vpop.f32.mrb[37].mxu0  ;;  %7067 = vst [vmem:[%s10498_s7 + $0x118] sm:$0xff] %v7003_v56  ;;  %v8956_v33 = vadd.f32 %v8707_v31, %v8443_v10  ;;  %v3885_v63 = vpop.f32.mrb[39].mxu1 }
 0x302   : > { %v8708_v60 = vpop.f32.mrb[38].mxu0  ;;  %7065 = vst [vmem:[%s10498_s7 + $0x108] sm:$0xff] %v7001_v58  ;;  %v8962_v21 = vadd.f32 %v6594_v11, %v3882_v43 }
 0x303   : > { %v6597_v7 = vpop.f32.mrb[39].mxu0  ;;  %v6942_v38 = vadd.f32 %v8956_v33, %v10492_v18  ;;  %v8968_v41 = vadd.f32 %v8708_v60, %v8444_v15 }
 0x304   : > { %v6940_v14 = vadd.f32 %v8962_v21, %v10492_v18  ;;  %v8974_v42 = vadd.f32 %v6597_v7, %v3885_v63 }
 0x305   : > { %v7006_v9 = vmax.f32 %v6942_v38, 0.0  ;;  %v6943_v26 = vadd.f32 %v8968_v41, %v10492_v18 }
 0x306   : > { %v7004_v36 = vmax.f32 %v6940_v14, 0.0  ;;  %v6941_v53 = vadd.f32 %v8974_v42, %v10492_v18  ;;  %v8447_v44 = vpop.f32.mrb[40].mxu1 }
 0x307   : > { %7070 = vst [vmem:[%s10498_s7 + $0x130] sm:$0xff] %v7006_v9  ;;  %v7007_v52 = vmax.f32 %v6943_v26, 0.0  ;;  %v3898_v0 = vpop.f32.mrb[41].mxu1 }
 0x308   : > { %v8711_v46 = vpop.f32.mrb[40].mxu0  ;;  %7068 = vst [vmem:[%s10498_s7 + $0x120] sm:$0xff] %v7004_v36  ;;  %v7005_v28 = vmax.f32 %v6941_v53, 0.0  ;;  %v8448_v50 = vpop.f32.mrb[42].mxu1 }
 0x309   : > { %v6610_v12 = vpop.f32.mrb[41].mxu0  ;;  %7071 = vst [vmem:[%s10498_s7 + $0x138] sm:$0xff] %v7007_v52  ;;  %v8980_v24 = vadd.f32 %v8711_v46, %v8447_v44  ;;  %v3901_v55 = vpop.f32.mrb[43].mxu1 }
 0x30a   : > { %v8712_v48 = vpop.f32.mrb[42].mxu0  ;;  %7069 = vst [vmem:[%s10498_s7 + $0x128] sm:$0xff] %v7005_v28  ;;  %v8986_v13 = vadd.f32 %v6610_v12, %v3898_v0 }
 0x30b   : > { %v6613_v51 = vpop.f32.mrb[43].mxu0  ;;  %v6946_v5 = vadd.f32 %v8980_v24, %v10492_v18  ;;  %v8992_v6 = vadd.f32 %v8712_v48, %v8448_v50 }
 0x30c   : > { %v6944_v27 = vadd.f32 %v8986_v13, %v10492_v18  ;;  %v8998_v17 = vadd.f32 %v6613_v51, %v3901_v55 }
 0x30d   : > { %v7010_v34 = vmax.f32 %v6946_v5, 0.0  ;;  %v6947_v20 = vadd.f32 %v8992_v6, %v10492_v18 }
 0x30e   : > { %v7008_v59 = vmax.f32 %v6944_v27, 0.0  ;;  %v6945_v25 = vadd.f32 %v8998_v17, %v10492_v18  ;;  %v8451_v16 = vpop.f32.mrb[44].mxu1 }
 0x30f   : > { %7074 = vst [vmem:[%s10498_s7 + $0x150] sm:$0xff] %v7010_v34  ;;  %v7011_v23 = vmax.f32 %v6947_v20, 0.0  ;;  %v3914_v8 = vpop.f32.mrb[45].mxu1 }
 0x310   : > { %v8715_v30 = vpop.f32.mrb[44].mxu0  ;;  %7072 = vst [vmem:[%s10498_s7 + $0x140] sm:$0xff] %v7008_v59  ;;  %v7009_v35 = vmax.f32 %v6945_v25, 0.0  ;;  %v8452_v37 = vpop.f32.mrb[46].mxu1 }
 0x311   : > { %v6626_v57 = vpop.f32.mrb[45].mxu0  ;;  %7075 = vst [vmem:[%s10498_s7 + $0x158] sm:$0xff] %v7011_v23  ;;  %v9004_v49 = vadd.f32 %v8715_v30, %v8451_v16  ;;  %v3917_v40 = vpop.f32.mrb[47].mxu1 }
 0x312   : > { %v8716_v29 = vpop.f32.mrb[46].mxu0  ;;  %7073 = vst [vmem:[%s10498_s7 + $0x148] sm:$0xff] %v7009_v35  ;;  %v9010_v45 = vadd.f32 %v6626_v57, %v3914_v8 }
 0x313   : > { %v6629_v32 = vpop.f32.mrb[47].mxu0  ;;  %v6950_v62 = vadd.f32 %v9004_v49, %v10492_v18  ;;  %v9016_v39 = vadd.f32 %v8716_v29, %v8452_v37 }
 0x314   : > { %v6948_v4 = vadd.f32 %v9010_v45, %v10492_v18  ;;  %v9022_v19 = vadd.f32 %v6629_v32, %v3917_v40 }
 0x315   : > { %v7014_v61 = vmax.f32 %v6950_v62, 0.0  ;;  %v6951_v47 = vadd.f32 %v9016_v39, %v10492_v18 }
 0x316   : > { %v7012_v22 = vmax.f32 %v6948_v4, 0.0  ;;  %v6949_v2 = vadd.f32 %v9022_v19, %v10492_v18  ;;  %v8455_v3 = vpop.f32.mrb[48].mxu1 }
 0x317   : > { %7078 = vst [vmem:[%s10498_s7 + $0x170] sm:$0xff] %v7014_v61  ;;  %v7015_v1 = vmax.f32 %v6951_v47, 0.0  ;;  %v3930_v10 = vpop.f32.mrb[49].mxu1 }
 0x318   : > { %v8719_v54 = vpop.f32.mrb[48].mxu0  ;;  %7076 = vst [vmem:[%s10498_s7 + $0x160] sm:$0xff] %v7012_v22  ;;  %v7013_v56 = vmax.f32 %v6949_v2, 0.0  ;;  %v8456_v43 = vpop.f32.mrb[50].mxu1 }
 0x319   : > { %v6642_v31 = vpop.f32.mrb[49].mxu0  ;;  %7079 = vst [vmem:[%s10498_s7 + $0x178] sm:$0xff] %v7015_v1  ;;  %v9028_v58 = vadd.f32 %v8719_v54, %v8455_v3  ;;  %v3933_v15 = vpop.f32.mrb[51].mxu1 }
 0x31a   : > { %v8720_v11 = vpop.f32.mrb[50].mxu0  ;;  %7077 = vst [vmem:[%s10498_s7 + $0x168] sm:$0xff] %v7013_v56  ;;  %v9034_v33 = vadd.f32 %v6642_v31, %v3930_v10 }
 0x31b   : > { %v6645_v60 = vpop.f32.mrb[51].mxu0  ;;  %v6954_v63 = vadd.f32 %v9028_v58, %v10492_v18  ;;  %v9040_v21 = vadd.f32 %v8720_v11, %v8456_v43 }
 0x31c   : > { %v6952_v7 = vadd.f32 %v9034_v33, %v10492_v18  ;;  %v9046_v38 = vadd.f32 %v6645_v60, %v3933_v15 }
 0x31d   : > { %v7018_v41 = vmax.f32 %v6954_v63, 0.0  ;;  %v6955_v14 = vadd.f32 %v9040_v21, %v10492_v18 }
 0x31e   : > { %v7016_v42 = vmax.f32 %v6952_v7, 0.0  ;;  %v6953_v9 = vadd.f32 %v9046_v38, %v10492_v18  ;;  %v8459_v26 = vpop.f32.mrb[52].mxu1 }
 0x31f   : > { %7082 = vst [vmem:[%s10498_s7 + $0x190] sm:$0xff] %v7018_v41  ;;  %v7019_v36 = vmax.f32 %v6955_v14, 0.0  ;;  %v3946_v44 = vpop.f32.mrb[53].mxu1 }
 0x320   : > { %v8723_v53 = vpop.f32.mrb[52].mxu0  ;;  %7080 = vst [vmem:[%s10498_s7 + $0x180] sm:$0xff] %v7016_v42  ;;  %v7017_v52 = vmax.f32 %v6953_v9, 0.0  ;;  %v8460_v0 = vpop.f32.mrb[54].mxu1 }
 0x321   : > { %v6658_v46 = vpop.f32.mrb[53].mxu0  ;;  %7083 = vst [vmem:[%s10498_s7 + $0x198] sm:$0xff] %v7019_v36  ;;  %v9052_v28 = vadd.f32 %v8723_v53, %v8459_v26  ;;  %v3949_v50 = vpop.f32.mrb[55].mxu1 }
 0x322   : > { %v8724_v12 = vpop.f32.mrb[54].mxu0  ;;  %7081 = vst [vmem:[%s10498_s7 + $0x188] sm:$0xff] %v7017_v52  ;;  %v9058_v24 = vadd.f32 %v6658_v46, %v3946_v44 }
 0x323   : > { %v6661_v48 = vpop.f32.mrb[55].mxu0  ;;  %v6958_v55 = vadd.f32 %v9052_v28, %v10492_v18  ;;  %v9064_v13 = vadd.f32 %v8724_v12, %v8460_v0 }
 0x324   : > { %v6956_v51 = vadd.f32 %v9058_v24, %v10492_v18  ;;  %v9070_v5 = vadd.f32 %v6661_v48, %v3949_v50 }
 0x325   : > { %v7022_v6 = vmax.f32 %v6958_v55, 0.0  ;;  %v6959_v27 = vadd.f32 %v9064_v13, %v10492_v18 }
 0x326   : > { %v7020_v17 = vmax.f32 %v6956_v51, 0.0  ;;  %v6957_v34 = vadd.f32 %v9070_v5, %v10492_v18  ;;  %v8463_v20 = vpop.f32.mrb[56].mxu1 }
 0x327   : > { %7086 = vst [vmem:[%s10498_s7 + $0x1b0] sm:$0xff] %v7022_v6  ;;  %v7023_v59 = vmax.f32 %v6959_v27, 0.0  ;;  %v3962_v16 = vpop.f32.mrb[57].mxu1 }
 0x328   : > { %v8727_v25 = vpop.f32.mrb[56].mxu0  ;;  %7084 = vst [vmem:[%s10498_s7 + $0x1a0] sm:$0xff] %v7020_v17  ;;  %v7021_v23 = vmax.f32 %v6957_v34, 0.0  ;;  %v8464_v8 = vpop.f32.mrb[58].mxu1 }
 0x329   : > { %v6674_v30 = vpop.f32.mrb[57].mxu0  ;;  %7087 = vst [vmem:[%s10498_s7 + $0x1b8] sm:$0xff] %v7023_v59  ;;  %v9076_v35 = vadd.f32 %v8727_v25, %v8463_v20  ;;  %v3965_v37 = vpop.f32.mrb[59].mxu1 }
 0x32a   : > { %v8728_v57 = vpop.f32.mrb[58].mxu0  ;;  %7085 = vst [vmem:[%s10498_s7 + $0x1a8] sm:$0xff] %v7021_v23  ;;  %v9082_v49 = vadd.f32 %v6674_v30, %v3962_v16 }
 0x32b   : > { %v6677_v29 = vpop.f32.mrb[59].mxu0  ;;  %v6962_v40 = vadd.f32 %v9076_v35, %v10492_v18  ;;  %v9088_v45 = vadd.f32 %v8728_v57, %v8464_v8 }
 0x32c   : > { %v6960_v32 = vadd.f32 %v9082_v49, %v10492_v18  ;;  %v9094_v62 = vadd.f32 %v6677_v29, %v3965_v37 }
 0x32d   : > { %v7026_v39 = vmax.f32 %v6962_v40, 0.0  ;;  %v6963_v4 = vadd.f32 %v9088_v45, %v10492_v18 }
 0x32e   : > { %v7024_v19 = vmax.f32 %v6960_v32, 0.0  ;;  %v6961_v61 = vadd.f32 %v9094_v62, %v10492_v18  ;;  %v8467_v47 = vpop.f32.mrb[60].mxu1 }
 0x32f   : > { %7090 = vst [vmem:[%s10498_s7 + $0x1d0] sm:$0xff] %v7026_v39  ;;  %v7027_v22 = vmax.f32 %v6963_v4, 0.0  ;;  %v3978_v3 = vpop.f32.mrb[61].mxu1 }
 0x330   : > { %v8731_v2 = vpop.f32.mrb[60].mxu0  ;;  %7088 = vst [vmem:[%s10498_s7 + $0x1c0] sm:$0xff] %v7024_v19  ;;  %v7025_v1 = vmax.f32 %v6961_v61, 0.0  ;;  %v8468_v10 = vpop.f32.mrb[62].mxu1 }
 0x331   : > { %v6690_v54 = vpop.f32.mrb[61].mxu0  ;;  %7091 = vst [vmem:[%s10498_s7 + $0x1d8] sm:$0xff] %v7027_v22  ;;  %v9100_v56 = vadd.f32 %v8731_v2, %v8467_v47  ;;  %v3981_v43 = vpop.f32.mrb[63].mxu1 }
 0x332   : > { %v8732_v31 = vpop.f32.mrb[62].mxu0  ;;  %7089 = vst [vmem:[%s10498_s7 + $0x1c8] sm:$0xff] %v7025_v1  ;;  %v9106_v58 = vadd.f32 %v6690_v54, %v3978_v3 }
 0x333   : > { %v6693_v11 = vpop.f32.mrb[63].mxu0  ;;  %v6966_v15 = vadd.f32 %v9100_v56, %v10492_v18  ;;  %v9112_v33 = vadd.f32 %v8732_v31, %v8468_v10 }
 0x334   : > { %v6964_v60 = vadd.f32 %v9106_v58, %v10492_v18  ;;  %v9118_v63 = vadd.f32 %v6693_v11, %v3981_v43 }
 0x335   : > { %v7030_v21 = vmax.f32 %v6966_v15, 0.0  ;;  %v6967_v7 = vadd.f32 %v9112_v33, %v10492_v18 }
 0x336   : > { %v7028_v38 = vmax.f32 %v6964_v60, 0.0  ;;  %v6965_v41 = vadd.f32 %v9118_v63, %v10492_v18 }
 0x337   : > { %7094 = vst [vmem:[%s10498_s7 + $0x1f0] sm:$0xff] %v7030_v21  ;;  %v7031_v14 = vmax.f32 %v6967_v7, 0.0 }
 0x338   : > { %7092 = vst [vmem:[%s10498_s7 + $0x1e0] sm:$0xff] %v7028_v38  ;;  %v7029_v42 = vmax.f32 %v6965_v41, 0.0 }
 0x339   : > { %7095 = vst [vmem:[%s10498_s7 + $0x1f8] sm:$0xff] %v7031_v14 }
 0x33a   : > { %7093 = vst [vmem:[%s10498_s7 + $0x1e8] sm:$0xff] %v7029_v42 }
 0x33b PF: > { %s14_s17 = sadd.s32 1, %s9625_s17   ;;  %s10665_s15 = smov %s9621_s16 }
 0x33c   : > { %p11_p7 = scmp.ge.s32.totalorder %s14_s17, 4   ;;  %s10666_s16 = smov %s10668_s18 }
 0x33e   :  { %13 = sbr.rel (!%p11_p7) target bundleno = 2 (0x2), region = 83 }

</bundles_post_ra>
